<compile_context>
chip_gen: v7x
topology: tpu7x:2x2x1
jax: 0.10.0
libtpu: 0.0.40
codegen_flags: <defaults>
</compile_context>

<pallas_src>
import jax
import jax.numpy as jnp
import numpy as np
from jax.experimental import pallas as pl
from jax.experimental.pallas import tpu as pltpu


def _round_up(x, m):
    return ((x + m - 1) // m) * m


# ----------------------------- Pallas kernels ------------------------------

def conv_relu_pool_kernel(p_ref, w_ref, b_ref, o_ref):
    """One fused conv(as matmul) + 2x2 max-pool + bias + ReLU tile.

    p_ref: (4*TM, Fp)  -- 4 pool-offset patch rows stacked (k-major) for TM pixels.
    w_ref: (Fp, Cp)    -- zero-padded weight (lane-dense Cp).
    b_ref: (1, Cp)
    o_ref: (TM, Cp)
    """
    tm = o_ref.shape[0]
    n_off = p_ref.shape[0] // tm                       # = 4 (2x2 pool), static
    y = jnp.dot(p_ref[...], w_ref[...],
                preferred_element_type=jnp.float32)    # single MXU matmul: (4*TM, Cp)
    acc = y[0:tm]
    for k in range(1, n_off):                          # sublane-aligned static slices
        acc = jnp.maximum(acc, y[k * tm:(k + 1) * tm])
    # max over offsets commutes with (+bias, ReLU); apply bias/ReLU once per pixel.
    o_ref[...] = jnp.maximum(acc + b_ref[...], 0.0)


def linear_kernel(x_ref, w_ref, b_ref, o_ref):
    o_ref[...] = (jnp.dot(x_ref[...], w_ref[...],
                          preferred_element_type=jnp.float32) + b_ref[...])


# ----------------------------- kernel wrappers ------------------------------

def conv_relu_pool(patches, w_padded, b_padded, cout, tm_cap=256):
    """patches: (4, M, F); w_padded: (Fp, Cp); b_padded: (1, Cp) -> (M, cout)."""
    G, M, F = patches.shape
    Fp, Cp = w_padded.shape
    TM = min(_round_up(M, 8), tm_cap)                  # multiple of 8
    Mpad = _round_up(M, TM)
    nt = Mpad // TM

    p = jnp.pad(patches, ((0, 0), (0, Mpad - M), (0, Fp - F)))
    # Interleave so each grid step reads one contiguous (4*TM, Fp) slab (rows k-major).
    p = p.reshape(G, nt, TM, Fp).transpose(1, 0, 2, 3).reshape(nt * G * TM, Fp)

    out = pl.pallas_call(
        conv_relu_pool_kernel,
        out_shape=jax.ShapeDtypeStruct((Mpad, Cp), jnp.float32),
        grid=(nt,),
        in_specs=[
            pl.BlockSpec((G * TM, Fp), lambda i: (i, 0)),
            pl.BlockSpec((Fp, Cp), lambda i: (0, 0)),
            pl.BlockSpec((1, Cp), lambda i: (0, 0)),
        ],
        out_specs=pl.BlockSpec((TM, Cp), lambda i: (i, 0)),
        compiler_params=pltpu.CompilerParams(
            dimension_semantics=("parallel",),
            vmem_limit_bytes=32 * 1024 * 1024),
    )(p, w_padded, b_padded)
    return out[:M, :cout]


def linear(x, w_padded, b_padded, nout, tm_cap=512):
    """x: (M, K); w_padded: (Kp, Np); b_padded: (1, Np) -> (M, nout)."""
    M, K = x.shape
    Kp, Np = w_padded.shape
    TM = min(_round_up(M, 8), tm_cap)
    Mpad = _round_up(M, TM)

    xp = jnp.pad(x, ((0, Mpad - M), (0, Kp - K)))
    out = pl.pallas_call(
        linear_kernel,
        out_shape=jax.ShapeDtypeStruct((Mpad, Np), jnp.float32),
        grid=(Mpad // TM,),
        in_specs=[
            pl.BlockSpec((TM, Kp), lambda i: (i, 0)),
            pl.BlockSpec((Kp, Np), lambda i: (0, 0)),
            pl.BlockSpec((1, Np), lambda i: (0, 0)),
        ],
        out_specs=pl.BlockSpec((TM, Np), lambda i: (i, 0)),
        compiler_params=pltpu.CompilerParams(
            dimension_semantics=("parallel",),
            vmem_limit_bytes=32 * 1024 * 1024),
    )(xp, w_padded, b_padded)
    return out[:M, :nout]


# --------------------------- plain-JAX glue (layout only) --------------------

def extract_patches_nhwc(x, K):
    """x: (N, H, W, C) -> (N, OH, OW, K*K*C), feature order (ky, kx, c)."""
    N, H, W, C = x.shape
    OH, OW = H - K + 1, W - K + 1
    cols = [x[:, ky:ky + OH, kx:kx + OW, :] for ky in range(K) for kx in range(K)]
    return jnp.concatenate(cols, axis=-1)


def group_pool_offsets(p):
    """(N, OH, OW, F) -> (4, N*(OH//2)*(OW//2), F); offsets ordered (dy, dx)."""
    N, OH, OW, F = p.shape
    assert OH % 2 == 0 and OW % 2 == 0
    PH, PW = OH // 2, OW // 2
    p = p.reshape(N, PH, 2, PW, 2, F)
    p = jnp.transpose(p, (2, 4, 0, 1, 3, 5))           # (dy, dx, N, PH, PW, F)
    return p.reshape(4, N * PH * PW, F)


def prepare_params(params):
    """One-time: transpose/permute/pad weights into lane-dense kernel operands."""
    w1, b1, w2, b2, fw, fb = params
    # Conv weights: OIHW -> (ky, kx, cin, cout) flat, matching NHWC patch feature order.
    w1m = jnp.transpose(w1, (2, 3, 1, 0)).reshape(75, 6)
    w2m = jnp.transpose(w2, (2, 3, 1, 0)).reshape(150, 20)
    # fc1: absorb PyTorch's NCHW (c,h,w) flatten order into a column permutation so
    # the forward path can stay NHWC with zero transposes.
    h, w, c = np.meshgrid(np.arange(5), np.arange(5), np.arange(20), indexing="ij")
    perm = (c * 25 + h * 5 + w).reshape(-1)            # nhwc index -> pytorch column
    fwm = jnp.asarray(fw)[:, perm].T                   # (500, 200), rows in NHWC order

    w1p = jnp.pad(w1m, ((0, 128 - 75), (0, 128 - 6)))
    b1p = jnp.pad(b1.reshape(1, 6), ((0, 0), (0, 128 - 6)))
    w2p = jnp.pad(w2m, ((0, 256 - 150), (0, 128 - 20)))
    b2p = jnp.pad(b2.reshape(1, 20), ((0, 0), (0, 128 - 20)))
    fwp = jnp.pad(fwm, ((0, 512 - 500), (0, 256 - 200)))
    fbp = jnp.pad(fb.reshape(1, 200), ((0, 0), (0, 256 - 200)))
    return (w1p, b1p, w2p, b2p, fwp, fbp)


# ------------------------------- forward pass -------------------------------

def net_forward(x, prepped):
    w1p, b1p, w2p, b2p, fwp, fbp = prepped
    N = x.shape[0]
    xh = jnp.transpose(x, (0, 2, 3, 1))                        # NCHW -> NHWC (once)

    # conv1 + ReLU + maxpool(2,2):   32x32 -> 28x28 -> 14x14
    p1 = group_pool_offsets(extract_patches_nhwc(xh, 5))        # (4, N*196, 75)
    y1 = conv_relu_pool(p1, w1p, b1p, cout=6)                   # (N*196, 6)
    y1 = y1.reshape(N, 14, 14, 6)                               # NHWC, no transpose

    # conv2 + ReLU + maxpool(2,2):   14x14 -> 10x10 -> 5x5
    p2 = group_pool_offsets(extract_patches_nhwc(y1, 5))        # (4, N*25, 150)
    y2 = conv_relu_pool(p2, w2p, b2p, cout=20)                  # (N*25, 20)
    y2 = y2.reshape(N, 5 * 5 * 20)                              # NHWC-flat (fc weight permuted)

    # fc1 (500 -> 200), padded to 512/256 lane-dense inside the wrapper
    return linear(y2, fwp, fbp, nout=200)


# ------------------------------ reference (check) ----------------------------

def reference_forward(x, params):
    w1, b1, w2, b2, fw, fb = params
    dn = ('NCHW', 'OIHW', 'NCHW')
    y = jax.lax.conv_general_dilated(x, w1, (1, 1), 'VALID', dimension_numbers=dn)
    y = jax.nn.relu(y + b1[None, :, None, None])
    y = jax.lax.reduce_window(y, -jnp.inf, jax.lax.max, (1, 1, 2, 2), (1, 1, 2, 2), 'VALID')
    y = jax.lax.conv_general_dilated(y, w2, (1, 1), 'VALID', dimension_numbers=dn)
    y = jax.nn.relu(y + b2[None, :, None, None])
    y = jax.lax.reduce_window(y, -jnp.inf, jax.lax.max, (1, 1, 2, 2), (1, 1, 2, 2), 'VALID')
    y = y.reshape(x.shape[0], -1)
    return y @ fw.T + fb


def init_params(key):
    ks = jax.random.split(key, 6)
    w1 = jax.random.normal(ks[0], (6, 3, 5, 5), jnp.float32) / np.sqrt(3 * 25)
    b1 = jax.random.normal(ks[1], (6,), jnp.float32) * 0.1
    w2 = jax.random.normal(ks[2], (20, 6, 5, 5), jnp.float32) / np.sqrt(6 * 25)
    b2 = jax.random.normal(ks[3], (20,), jnp.float32) * 0.1
    fw = jax.random.normal(ks[4], (200, 500), jnp.float32) / np.sqrt(500)
    fb = jax.random.normal(ks[5], (200,), jnp.float32) * 0.1
    return (w1, b1, w2, b2, fw, fb)


if __name__ == "__main__":
    key = jax.random.PRNGKey(0)
    kx, kp = jax.random.split(key)
    # fc1 = Linear(20*5*5, 200) forces 32x32 spatial input (CIFAR-style); batch=2.
    x = jax.random.normal(kx, (2, 3, 32, 32), jnp.float32)
    params = init_params(kp)
    prepped = prepare_params(params)

    fwd = jax.jit(net_forward)
    out = jax.block_until_ready(fwd(x, prepped))
    ref = jax.block_until_ready(reference_forward(x, params))

    assert out.shape == (2, 200), out.shape
    if not np.allclose(np.asarray(out), np.asarray(ref), rtol=2e-2, atol=2e-2):
        raise AssertionError("Pallas output does not match reference")
    print("KERNEL_OK")
</pallas_src>

<mosaic_0001>
module attributes {stable_mosaic.version = 11 : i64} {
  func.func @conv_relu_pool_kernel(%arg0: i32, %arg1: memref<1024x128xf32, #tpu.memory_space<vmem>>, %arg2: memref<128x128xf32, #tpu.memory_space<vmem>>, %arg3: memref<1x128xf32, #tpu.memory_space<vmem>>, %arg4: memref<256x128xf32, #tpu.memory_space<vmem>>) attributes {dimension_semantics = [#tpu.dimension_semantics<parallel>], iteration_bounds = array<i64: 2>, scalar_prefetch = 0 : i64, scratch_operands = 0 : i64, tpu.core_type = #tpu.core_type<tc>, window_params = [{transform_indices = @transform_0, window_bounds = array<i64: 1024, 128>}, {pipeline_mode = #tpu.pipeline_mode<synchronous>, transform_indices = @transform_1, window_bounds = array<i64: 128, 128>}, {pipeline_mode = #tpu.pipeline_mode<synchronous>, transform_indices = @transform_2, window_bounds = array<i64: 1, 128>}, {transform_indices = @transform_3, window_bounds = array<i64: 256, 128>}]} {
    %c0 = arith.constant 0 : index
    %c0_0 = arith.constant 0 : index
    %0 = vector.load %arg1[%c0, %c0_0] : memref<1024x128xf32, #tpu.memory_space<vmem>>, vector<1024x128xf32>
    %c0_1 = arith.constant 0 : index
    %c0_2 = arith.constant 0 : index
    %1 = vector.load %arg2[%c0_1, %c0_2] : memref<128x128xf32, #tpu.memory_space<vmem>>, vector<128x128xf32>
    %cst = arith.constant dense<0.000000e+00> : vector<1024x128xf32>
    %2 = tpu.matmul %0, %1, %cst {dimension_numbers = #tpu.dot_dimension_numbers<[1], [0], [0], [1], [0, 0, 1, 1], [], []>} : vector<1024x128xf32>, vector<128x128xf32>, vector<1024x128xf32> -> vector<1024x128xf32>
    %3 = vector.extract_strided_slice %2 {offsets = [0, 0], sizes = [256, 128], strides = [1, 1]} : vector<1024x128xf32> to vector<256x128xf32>
    %4 = vector.extract_strided_slice %2 {offsets = [256, 0], sizes = [256, 128], strides = [1, 1]} : vector<1024x128xf32> to vector<256x128xf32>
    %5 = arith.maximumf %3, %4 : vector<256x128xf32>
    %6 = vector.extract_strided_slice %2 {offsets = [512, 0], sizes = [256, 128], strides = [1, 1]} : vector<1024x128xf32> to vector<256x128xf32>
    %7 = arith.maximumf %5, %6 : vector<256x128xf32>
    %8 = vector.extract_strided_slice %2 {offsets = [768, 0], sizes = [256, 128], strides = [1, 1]} : vector<1024x128xf32> to vector<256x128xf32>
    %9 = arith.maximumf %7, %8 : vector<256x128xf32>
    %c0_3 = arith.constant 0 : index
    %c0_4 = arith.constant 0 : index
    %10 = vector.load %arg3[%c0_3, %c0_4] : memref<1x128xf32, #tpu.memory_space<vmem>>, vector<1x128xf32>
    %11 = vector.broadcast %10 : vector<1x128xf32> to vector<256x128xf32>
    %12 = arith.addf %9, %11 : vector<256x128xf32>
    %cst_5 = arith.constant 0.000000e+00 : f32
    %13 = vector.broadcast %cst_5 : f32 to vector<256x128xf32>
    %14 = arith.maximumf %12, %13 : vector<256x128xf32>
    %c0_6 = arith.constant 0 : index
    %c0_7 = arith.constant 0 : index
    %15 = vector.load %arg4[%c0_6, %c0_7] : memref<256x128xf32, #tpu.memory_space<vmem>>, vector<256x128xf32>
    tpu.vector_store %arg4[%c0_6, %c0_7], %14 {strides = array<i32>} : memref<256x128xf32, #tpu.memory_space<vmem>>, vector<256x128xf32>,
    return
  }
  func.func @transform_0(%arg0: i32) -> (i32, i32) {
    %c0_i32 = arith.constant 0 : i32
    %c0_i32_0 = arith.constant 0 : i32
    return %arg0, %c0_i32 : i32, i32
  }
  func.func @transform_1(%arg0: i32) -> (i32, i32) {
    %c0_i32 = arith.constant 0 : i32
    %c0_i32_0 = arith.constant 0 : i32
    %c0_i32_1 = arith.constant 0 : i32
    return %c0_i32, %c0_i32_0 : i32, i32
  }
  func.func @transform_2(%arg0: i32) -> (i32, i32) {
    %c0_i32 = arith.constant 0 : i32
    %c0_i32_0 = arith.constant 0 : i32
    %c0_i32_1 = arith.constant 0 : i32
    return %c0_i32, %c0_i32_0 : i32, i32
  }
  func.func @transform_3(%arg0: i32) -> (i32, i32) {
    %c0_i32 = arith.constant 0 : i32
    %c0_i32_0 = arith.constant 0 : i32
    return %arg0, %c0_i32 : i32, i32
  }
}

module attributes {stable_mosaic.version = 11 : i64} {
  func.func @conv_relu_pool_kernel(%arg0: i32, %arg1: memref<224x256xf32, #tpu.memory_space<vmem>>, %arg2: memref<256x128xf32, #tpu.memory_space<vmem>>, %arg3: memref<1x128xf32, #tpu.memory_space<vmem>>, %arg4: memref<56x128xf32, #tpu.memory_space<vmem>>) attributes {dimension_semantics = [#tpu.dimension_semantics<parallel>], iteration_bounds = array<i64: 1>, scalar_prefetch = 0 : i64, scratch_operands = 0 : i64, tpu.core_type = #tpu.core_type<tc>, window_params = [{transform_indices = @transform_0, window_bounds = array<i64: 224, 256>}, {pipeline_mode = #tpu.pipeline_mode<synchronous>, transform_indices = @transform_1, window_bounds = array<i64: 256, 128>}, {pipeline_mode = #tpu.pipeline_mode<synchronous>, transform_indices = @transform_2, window_bounds = array<i64: 1, 128>}, {transform_indices = @transform_3, window_bounds = array<i64: 56, 128>}]} {
    %c0 = arith.constant 0 : index
    %c0_0 = arith.constant 0 : index
    %0 = vector.load %arg1[%c0, %c0_0] : memref<224x256xf32, #tpu.memory_space<vmem>>, vector<224x256xf32>
    %c0_1 = arith.constant 0 : index
    %c0_2 = arith.constant 0 : index
    %1 = vector.load %arg2[%c0_1, %c0_2] : memref<256x128xf32, #tpu.memory_space<vmem>>, vector<256x128xf32>
    %cst = arith.constant dense<0.000000e+00> : vector<224x128xf32>
    %2 = tpu.matmul %0, %1, %cst {dimension_numbers = #tpu.dot_dimension_numbers<[1], [0], [0], [1], [0, 0, 1, 1], [], []>} : vector<224x256xf32>, vector<256x128xf32>, vector<224x128xf32> -> vector<224x128xf32>
    %3 = vector.extract_strided_slice %2 {offsets = [0, 0], sizes = [56, 128], strides = [1, 1]} : vector<224x128xf32> to vector<56x128xf32>
    %4 = vector.extract_strided_slice %2 {offsets = [56, 0], sizes = [56, 128], strides = [1, 1]} : vector<224x128xf32> to vector<56x128xf32>
    %5 = arith.maximumf %3, %4 : vector<56x128xf32>
    %6 = vector.extract_strided_slice %2 {offsets = [112, 0], sizes = [56, 128], strides = [1, 1]} : vector<224x128xf32> to vector<56x128xf32>
    %7 = arith.maximumf %5, %6 : vector<56x128xf32>
    %8 = vector.extract_strided_slice %2 {offsets = [168, 0], sizes = [56, 128], strides = [1, 1]} : vector<224x128xf32> to vector<56x128xf32>
    %9 = arith.maximumf %7, %8 : vector<56x128xf32>
    %c0_3 = arith.constant 0 : index
    %c0_4 = arith.constant 0 : index
    %10 = vector.load %arg3[%c0_3, %c0_4] : memref<1x128xf32, #tpu.memory_space<vmem>>, vector<1x128xf32>
    %11 = vector.broadcast %10 : vector<1x128xf32> to vector<56x128xf32>
    %12 = arith.addf %9, %11 : vector<56x128xf32>
    %cst_5 = arith.constant 0.000000e+00 : f32
    %13 = vector.broadcast %cst_5 : f32 to vector<56x128xf32>
    %14 = arith.maximumf %12, %13 : vector<56x128xf32>
    %c0_6 = arith.constant 0 : index
    %c0_7 = arith.constant 0 : index
    %15 = vector.load %arg4[%c0_6, %c0_7] : memref<56x128xf32, #tpu.memory_space<vmem>>, vector<56x128xf32>
    tpu.vector_store %arg4[%c0_6, %c0_7], %14 {strides = array<i32>} : memref<56x128xf32, #tpu.memory_space<vmem>>, vector<56x128xf32>,
    return
  }
  func.func @transform_0(%arg0: i32) -> (i32, i32) {
    %c0_i32 = arith.constant 0 : i32
    %c0_i32_0 = arith.constant 0 : i32
    return %arg0, %c0_i32 : i32, i32
  }
  func.func @transform_1(%arg0: i32) -> (i32, i32) {
    %c0_i32 = arith.constant 0 : i32
    %c0_i32_0 = arith.constant 0 : i32
    %c0_i32_1 = arith.constant 0 : i32
    return %c0_i32, %c0_i32_0 : i32, i32
  }
  func.func @transform_2(%arg0: i32) -> (i32, i32) {
    %c0_i32 = arith.constant 0 : i32
    %c0_i32_0 = arith.constant 0 : i32
    %c0_i32_1 = arith.constant 0 : i32
    return %c0_i32, %c0_i32_0 : i32, i32
  }
  func.func @transform_3(%arg0: i32) -> (i32, i32) {
    %c0_i32 = arith.constant 0 : i32
    %c0_i32_0 = arith.constant 0 : i32
    return %arg0, %c0_i32 : i32, i32
  }
}

module attributes {stable_mosaic.version = 11 : i64} {
  func.func @linear_kernel(%arg0: i32, %arg1: memref<8x512xf32, #tpu.memory_space<vmem>>, %arg2: memref<512x256xf32, #tpu.memory_space<vmem>>, %arg3: memref<1x256xf32, #tpu.memory_space<vmem>>, %arg4: memref<8x256xf32, #tpu.memory_space<vmem>>) attributes {dimension_semantics = [#tpu.dimension_semantics<parallel>], iteration_bounds = array<i64: 1>, scalar_prefetch = 0 : i64, scratch_operands = 0 : i64, tpu.core_type = #tpu.core_type<tc>, window_params = [{transform_indices = @transform_0, window_bounds = array<i64: 8, 512>}, {pipeline_mode = #tpu.pipeline_mode<synchronous>, transform_indices = @transform_1, window_bounds = array<i64: 512, 256>}, {pipeline_mode = #tpu.pipeline_mode<synchronous>, transform_indices = @transform_2, window_bounds = array<i64: 1, 256>}, {transform_indices = @transform_3, window_bounds = array<i64: 8, 256>}]} {
    %c0 = arith.constant 0 : index
    %c0_0 = arith.constant 0 : index
    %0 = vector.load %arg1[%c0, %c0_0] : memref<8x512xf32, #tpu.memory_space<vmem>>, vector<8x512xf32>
    %c0_1 = arith.constant 0 : index
    %c0_2 = arith.constant 0 : index
    %1 = vector.load %arg2[%c0_1, %c0_2] : memref<512x256xf32, #tpu.memory_space<vmem>>, vector<512x256xf32>
    %cst = arith.constant dense<0.000000e+00> : vector<8x256xf32>
    %2 = tpu.matmul %0, %1, %cst {dimension_numbers = #tpu.dot_dimension_numbers<[1], [0], [0], [1], [0, 0, 1, 1], [], []>} : vector<8x512xf32>, vector<512x256xf32>, vector<8x256xf32> -> vector<8x256xf32>
    %c0_3 = arith.constant 0 : index
    %c0_4 = arith.constant 0 : index
    %3 = vector.load %arg3[%c0_3, %c0_4] : memref<1x256xf32, #tpu.memory_space<vmem>>, vector<1x256xf32>
    %4 = vector.broadcast %3 : vector<1x256xf32> to vector<8x256xf32>
    %5 = arith.addf %2, %4 : vector<8x256xf32>
    %c0_5 = arith.constant 0 : index
    %c0_6 = arith.constant 0 : index
    %6 = vector.load %arg4[%c0_5, %c0_6] : memref<8x256xf32, #tpu.memory_space<vmem>>, vector<8x256xf32>
    tpu.vector_store %arg4[%c0_5, %c0_6], %5 {strides = array<i32>} : memref<8x256xf32, #tpu.memory_space<vmem>>, vector<8x256xf32>,
    return
  }
  func.func @transform_0(%arg0: i32) -> (i32, i32) {
    %c0_i32 = arith.constant 0 : i32
    %c0_i32_0 = arith.constant 0 : i32
    return %arg0, %c0_i32 : i32, i32
  }
  func.func @transform_1(%arg0: i32) -> (i32, i32) {
    %c0_i32 = arith.constant 0 : i32
    %c0_i32_0 = arith.constant 0 : i32
    %c0_i32_1 = arith.constant 0 : i32
    return %c0_i32, %c0_i32_0 : i32, i32
  }
  func.func @transform_2(%arg0: i32) -> (i32, i32) {
    %c0_i32 = arith.constant 0 : i32
    %c0_i32_0 = arith.constant 0 : i32
    %c0_i32_1 = arith.constant 0 : i32
    return %c0_i32, %c0_i32_0 : i32, i32
  }
  func.func @transform_3(%arg0: i32) -> (i32, i32) {
    %c0_i32 = arith.constant 0 : i32
    %c0_i32_0 = arith.constant 0 : i32
    return %arg0, %c0_i32 : i32, i32
  }
}

</mosaic_0001>

<bundles_post_ra>
// kernel: net_forward.3
= control target key start
LH: loop header
LB: loop body
LE: loop exit
PB: predicated region body
PF: predicated region fallthrough
CT: control target
= control target key end

     0   :  { %s1742_s12 = smov 0   ;;  %s2204_s0 = inlined_call_operand.vmem [shape: f32[2048,128], index: 0, kind: input, shape index: {}]   ;;  %s2205_s1 = inlined_call_operand.vmem [shape: f32[128,128], index: 1, kind: input, shape index: {}]   ;;  %s2206_s2 = inlined_call_operand.vmem [shape: f32[1,128], index: 2, kind: input, shape index: {}]   ;;  %s2207_s3 = inlined_call_operand.vmem [shape: f32[512,128], index: 3, kind: output, shape index: {}]  }
   0x1 LB: > { %s1278_s13 = sadd.s32 4294967295, %s1720_s12   ;;  %p1282_p0 = scmp.ge.s32.totalorder %s1720_s12, 1  ;;  %s1720_s12 = sphi %s1742_s12, %s13_s12  }
   0x2   : > { %p138_p1 = scmp.lt.s32.totalorder %s1720_s12, 3 }
   0x4   : > { %p139_p2 = pnand %p1282_p0, %p138_p1 }
   0x6   : > { %142 = sbr.rel (%p139_p2) target bundleno = 396 (0x18c), region = 32 }
   0xd   : > { %v302_v0 = vld [vmem:[%s2205_s1] sm:$0xff]  ;;  %v303_v1 = vld [vmem:[%s2205_s1 + $0x8] sm:$0xff]  ;;  %v304_v2 = vld [vmem:[%s2205_s1 + $0x10] sm:$0xff]  ;;  %s1283_s20 = sshll.u32 %s1278_s13, 7  ;;  %s1285_s26 = sshll.u32 %s1278_s13, 5 }
   0xe   : > { %v1658_v3 = vpack.c.bf16 %v303_v1, %v302_v0  ;;  %v305_v4 = vld [vmem:[%s2205_s1 + $0x18] sm:$0xff]  ;;  %p163_p3 = scmp.lt.s32.totalorder %s1283_s20, 255  ;;  %v306_v6 = vld [vmem:[%s2205_s1 + $0x20] sm:$0xff]  ;;  %v307_v7 = vld [vmem:[%s2205_s1 + $0x28] sm:$0xff]  ;;  %p169_p4 = scmp.lt.s32.totalorder %s1285_s26, 63 }
   0xf   : > { %v1662_v5 = vpack.c.bf16 %v305_v4, %v304_v2  ;;  %v1666_v8 = vpack.c.bf16 %v307_v7, %v306_v6  ;;  %v308_v9 = vld [vmem:[%s2205_s1 + $0x30] sm:$0xff]  ;;  %v309_v10 = vld [vmem:[%s2205_s1 + $0x38] sm:$0xff]  ;;  %v310_v14 = vld [vmem:[%s2205_s1 + $0x40] sm:$0xff] }
  0x10   : > { %1659 = vmatprep.subr.bf16.mxu0 %v1658_v3  ;;  %1690 = vmatprep.subr.bf16.mxu1 %v1658_v3  ;;  %s2237_s20 = smov (!%p163_p3, %s1283_s20), 255  ;;  %v1670_v13 = vpack.c.bf16 %v309_v10, %v308_v9  ;;  %v311_v15 = vld [vmem:[%s2205_s1 + $0x48] sm:$0xff]  ;;  %v312_v17 = vld [vmem:[%s2205_s1 + $0x50] sm:$0xff]  ;;  %v313_v18 = vld [vmem:[%s2205_s1 + $0x58] sm:$0xff]  ;;  %s2239_s26 = smov (!%p169_p4, %s1285_s26), 63 }
  0x11   : > { %1661 = vmatpush3.bf16.msra.mxu0 %v1658_v3  ;;  %1698 = vmatpush3.bf16.msra.mxu1 %v1658_v3  ;;  %s1284_s27 = sshll.u32 %s2237_s20, 3  ;;  %v1674_v16 = vpack.c.bf16 %v311_v15, %v310_v14  ;;  %v1678_v19 = vpack.c.bf16 %v313_v18, %v312_v17  ;;  %v314_v20 = vld [vmem:[%s2205_s1 + $0x60] sm:$0xff]  ;;  %v315_v21 = vld [vmem:[%s2205_s1 + $0x68] sm:$0xff]  ;;  %v316_v23 = vld [vmem:[%s2205_s1 + $0x70] sm:$0xff]  ;;  %s1286_s28 = sshll.u32 %s2239_s26, 3 }
  0x12   : > { %1663 = vmatprep.subr.bf16.mxu0 %v1662_v5  ;;  %1691 = vmatprep.subr.bf16.mxu1 %v1662_v5  ;;  %s1779_s7 = scalar_lea.vmem %s2204_s0, %s1284_s27  ;;  %v1682_v22 = vpack.c.bf16 %v315_v21, %v314_v20  ;;  %v317_v24 = vld [vmem:[%s2205_s1 + $0x78] sm:$0xff]  ;;  %s2079_s4 = scalar_lea.vmem %s2207_s3, %s1286_s28 }
  0x13   : > { %v174_v11 = vld [vmem:[%s1779_s7] sm:$0xff]  ;;  %v1686_v25 = vpack.c.bf16 %v317_v24, %v316_v23  ;;  %v175_v26 = vld [vmem:[%s1779_s7 + $0x8] sm:$0xff]  ;;  %v176_v28 = vld [vmem:[%s1779_s7 + $0x10] sm:$0xff] }
  0x14   : > { %v238_v12 = vld [vmem:[%s1779_s7 + $0x200] sm:$0xff]  ;;  %1466 = vmatprep.mubr.f32.mxu0 %v174_v11  ;;  %v239_v27 = vld [vmem:[%s1779_s7 + $0x208] sm:$0xff]  ;;  %v240_v29 = vld [vmem:[%s1779_s7 + $0x210] sm:$0xff] }
  0x15   : > { %1665 = vmatpush3.bf16.msra.mxu0 %v1662_v5  ;;  %1699 = vmatpush3.bf16.msra.mxu1 %v1662_v5  ;;  %v177_v30 = vld [vmem:[%s1779_s7 + $0x18] sm:$0xff]  ;;  %v178_v32 = vld [vmem:[%s1779_s7 + $0x20] sm:$0xff]  ;;  %v179_v34 = vld [vmem:[%s1779_s7 + $0x28] sm:$0xff] }
  0x16   : > { %1667 = vmatprep.subr.bf16.mxu0 %v1666_v8  ;;  %1692 = vmatprep.subr.bf16.mxu1 %v1666_v8  ;;  %v241_v31 = vld [vmem:[%s1779_s7 + $0x218] sm:$0xff]  ;;  %v242_v33 = vld [vmem:[%s1779_s7 + $0x220] sm:$0xff]  ;;  %v243_v35 = vld [vmem:[%s1779_s7 + $0x228] sm:$0xff] }
  0x17   : > { %1562 = vmatprep.mubr.f32.mxu1 %v238_v12  ;;  %v180_v36 = vld [vmem:[%s1779_s7 + $0x30] sm:$0xff]  ;;  %v181_v38 = vld [vmem:[%s1779_s7 + $0x38] sm:$0xff]  ;;  %v182_v40 = vld [vmem:[%s1779_s7 + $0x40] sm:$0xff] }
  0x18   : > { %v244_v37 = vld [vmem:[%s1779_s7 + $0x230] sm:$0xff]  ;;  %v245_v39 = vld [vmem:[%s1779_s7 + $0x238] sm:$0xff]  ;;  %v246_v41 = vld [vmem:[%s1779_s7 + $0x240] sm:$0xff] }
  0x19   : > { %1669 = vmatpush3.bf16.msra.mxu0 %v1666_v8  ;;  %1700 = vmatpush3.bf16.msra.mxu1 %v1666_v8  ;;  %v183_v42 = vld [vmem:[%s1779_s7 + $0x48] sm:$0xff]  ;;  %v184_v44 = vld [vmem:[%s1779_s7 + $0x50] sm:$0xff]  ;;  %v185_v46 = vld [vmem:[%s1779_s7 + $0x58] sm:$0xff] }
  0x1a   : > { %1671 = vmatprep.subr.bf16.mxu0 %v1670_v13  ;;  %1693 = vmatprep.subr.bf16.mxu1 %v1670_v13  ;;  %v247_v43 = vld [vmem:[%s1779_s7 + $0x248] sm:$0xff]  ;;  %v248_v45 = vld [vmem:[%s1779_s7 + $0x250] sm:$0xff]  ;;  %v249_v47 = vld [vmem:[%s1779_s7 + $0x258] sm:$0xff] }
  0x1b   : > { %v186_v48 = vld [vmem:[%s1779_s7 + $0x60] sm:$0xff]  ;;  %v187_v50 = vld [vmem:[%s1779_s7 + $0x68] sm:$0xff]  ;;  %v188_v52 = vld [vmem:[%s1779_s7 + $0x70] sm:$0xff] }
  0x1c   : > { %v250_v49 = vld [vmem:[%s1779_s7 + $0x260] sm:$0xff]  ;;  %v251_v51 = vld [vmem:[%s1779_s7 + $0x268] sm:$0xff]  ;;  %v252_v53 = vld [vmem:[%s1779_s7 + $0x270] sm:$0xff] }
  0x1d   : > { %1673 = vmatpush3.bf16.msra.mxu0 %v1670_v13  ;;  %1701 = vmatpush3.bf16.msra.mxu1 %v1670_v13  ;;  %v189_v54 = vld [vmem:[%s1779_s7 + $0x78] sm:$0xff]  ;;  %v190_v56 = vld [vmem:[%s1779_s7 + $0x80] sm:$0xff]  ;;  %v191_v58 = vld [vmem:[%s1779_s7 + $0x88] sm:$0xff] }
  0x1e   : > { %1675 = vmatprep.subr.bf16.mxu0 %v1674_v16  ;;  %1694 = vmatprep.subr.bf16.mxu1 %v1674_v16  ;;  %v253_v55 = vld [vmem:[%s1779_s7 + $0x278] sm:$0xff]  ;;  %v254_v57 = vld [vmem:[%s1779_s7 + $0x280] sm:$0xff]  ;;  %v255_v59 = vld [vmem:[%s1779_s7 + $0x288] sm:$0xff] }
  0x1f   : > { %v192_v60 = vld [vmem:[%s1779_s7 + $0x90] sm:$0xff]  ;;  %v193_v62 = vld [vmem:[%s1779_s7 + $0x98] sm:$0xff]  ;;  %v194_v0 = vld [vmem:[%s1779_s7 + $0xa0] sm:$0xff] }
  0x20   : > { %v256_v61 = vld [vmem:[%s1779_s7 + $0x290] sm:$0xff]  ;;  %v257_v63 = vld [vmem:[%s1779_s7 + $0x298] sm:$0xff]  ;;  %v258_v1 = vld [vmem:[%s1779_s7 + $0x2a0] sm:$0xff] }
  0x21   : > { %1677 = vmatpush3.bf16.msra.mxu0 %v1674_v16  ;;  %1702 = vmatpush3.bf16.msra.mxu1 %v1674_v16  ;;  %v195_v2 = vld [vmem:[%s1779_s7 + $0xa8] sm:$0xff]  ;;  %v196_v4 = vld [vmem:[%s1779_s7 + $0xb0] sm:$0xff]  ;;  %v197_v6 = vld [vmem:[%s1779_s7 + $0xb8] sm:$0xff] }
  0x22   : > { %1679 = vmatprep.subr.bf16.mxu0 %v1678_v19  ;;  %1695 = vmatprep.subr.bf16.mxu1 %v1678_v19  ;;  %v259_v3 = vld [vmem:[%s1779_s7 + $0x2a8] sm:$0xff]  ;;  %v260_v5 = vld [vmem:[%s1779_s7 + $0x2b0] sm:$0xff]  ;;  %v261_v7 = vld [vmem:[%s1779_s7 + $0x2b8] sm:$0xff] }
  0x23   : > { %v198_v8 = vld [vmem:[%s1779_s7 + $0xc0] sm:$0xff]  ;;  %v199_v10 = vld [vmem:[%s1779_s7 + $0xc8] sm:$0xff]  ;;  %v200_v12 = vld [vmem:[%s1779_s7 + $0xd0] sm:$0xff] }
  0x24   : > { %v262_v9 = vld [vmem:[%s1779_s7 + $0x2c0] sm:$0xff]  ;;  %v263_v11 = vld [vmem:[%s1779_s7 + $0x2c8] sm:$0xff]  ;;  %v264_v13 = vld [vmem:[%s1779_s7 + $0x2d0] sm:$0xff] }
  0x25   : > { %1681 = vmatpush3.bf16.msra.mxu0 %v1678_v19  ;;  %1703 = vmatpush3.bf16.msra.mxu1 %v1678_v19  ;;  %v201_v14 = vld [vmem:[%s1779_s7 + $0xd8] sm:$0xff]  ;;  %v202_v16 = vld [vmem:[%s1779_s7 + $0xe0] sm:$0xff]  ;;  %v203_v18 = vld [vmem:[%s1779_s7 + $0xe8] sm:$0xff] }
  0x26   : > { %1683 = vmatprep.subr.bf16.mxu0 %v1682_v22  ;;  %1696 = vmatprep.subr.bf16.mxu1 %v1682_v22  ;;  %v265_v15 = vld [vmem:[%s1779_s7 + $0x2d8] sm:$0xff]  ;;  %v266_v17 = vld [vmem:[%s1779_s7 + $0x2e0] sm:$0xff]  ;;  %v267_v19 = vld [vmem:[%s1779_s7 + $0x2e8] sm:$0xff] }
  0x27   : > { %v204_v20 = vld [vmem:[%s1779_s7 + $0xf0] sm:$0xff]  ;;  %v269_v23 = vld [vmem:[%s1779_s7 + $0x2f8] sm:$0xff]  ;;  %v206_v24 = vld [vmem:[%s1779_s7 + $0x100] sm:$0xff] }
  0x28   : > { %v268_v21 = vld [vmem:[%s1779_s7 + $0x2f0] sm:$0xff] }
  0x29   : > { %1685 = vmatpush3.bf16.msra.mxu0 %v1682_v22  ;;  %1704 = vmatpush3.bf16.msra.mxu1 %v1682_v22  ;;  %v205_v22 = vld [vmem:[%s1779_s7 + $0xf8] sm:$0xff] }
  0x2a   : > { %1687 = vmatprep.subr.bf16.mxu0 %v1686_v25  ;;  %1697 = vmatprep.subr.bf16.mxu1 %v1686_v25 }
  0x2d   : > { %1689 = vmatpush3.bf16.msra.mxu0 %v1686_v25  ;;  %1705 = vmatpush3.bf16.msra.mxu1 %v1686_v25  ;;  %v270_v25 = vld [vmem:[%s1779_s7 + $0x300] sm:$0xff] }
  0x30   : > { %1467 = vmatmul.mubr.f32.vlgmr.msra.gmra.mrb[0].mxu0 %v175_v26  ;;  %1563 = vmatmul.mubr.f32.vlgmr.msra.gmra.mrb[0].mxu1 %v239_v27  ;;  %v207_v26 = vld [vmem:[%s1779_s7 + $0x108] sm:$0xff] }
  0x31   : > { %1469 = vmatprep.mubr.f32.mxu0 %v176_v28  ;;  %1565 = vmatprep.mubr.f32.mxu1 %v240_v29  ;;  %v271_v27 = vld [vmem:[%s1779_s7 + $0x308] sm:$0xff]  ;;  %v208_v28 = vld [vmem:[%s1779_s7 + $0x110] sm:$0xff] }
  0x32   : > { %v272_v29 = vld [vmem:[%s1779_s7 + $0x310] sm:$0xff] }
  0x34   : > { %1470 = vmatmul.mubr.f32.gmra.mrb[2].mxu0 %v177_v30  ;;  %1566 = vmatmul.mubr.f32.gmra.mrb[2].mxu1 %v241_v31  ;;  %v209_v30 = vld [vmem:[%s1779_s7 + $0x118] sm:$0xff] }
  0x35   : > { %1472 = vmatprep.mubr.f32.mxu0 %v178_v32  ;;  %1568 = vmatprep.mubr.f32.mxu1 %v242_v33  ;;  %v273_v31 = vld [vmem:[%s1779_s7 + $0x318] sm:$0xff]  ;;  %v210_v32 = vld [vmem:[%s1779_s7 + $0x120] sm:$0xff] }
  0x36   : > { %v274_v33 = vld [vmem:[%s1779_s7 + $0x320] sm:$0xff] }
  0x38   : > { %1473 = vmatmul.mubr.f32.gmra.mrb[4].mxu0 %v179_v34  ;;  %1569 = vmatmul.mubr.f32.gmra.mrb[4].mxu1 %v243_v35  ;;  %v211_v34 = vld [vmem:[%s1779_s7 + $0x128] sm:$0xff] }
  0x39   : > { %1475 = vmatprep.mubr.f32.mxu0 %v180_v36  ;;  %1571 = vmatprep.mubr.f32.mxu1 %v244_v37  ;;  %v275_v35 = vld [vmem:[%s1779_s7 + $0x328] sm:$0xff]  ;;  %v212_v36 = vld [vmem:[%s1779_s7 + $0x130] sm:$0xff] }
  0x3a   : > { %v276_v37 = vld [vmem:[%s1779_s7 + $0x330] sm:$0xff] }
  0x3c   : > { %1476 = vmatmul.mubr.f32.gmra.mrb[6].mxu0 %v181_v38  ;;  %1572 = vmatmul.mubr.f32.gmra.mrb[6].mxu1 %v245_v39  ;;  %v213_v38 = vld [vmem:[%s1779_s7 + $0x138] sm:$0xff] }
  0x3d   : > { %1478 = vmatprep.mubr.f32.mxu0 %v182_v40  ;;  %1574 = vmatprep.mubr.f32.mxu1 %v246_v41  ;;  %v277_v39 = vld [vmem:[%s1779_s7 + $0x338] sm:$0xff]  ;;  %v214_v40 = vld [vmem:[%s1779_s7 + $0x140] sm:$0xff] }
  0x3e   : > { %v278_v41 = vld [vmem:[%s1779_s7 + $0x340] sm:$0xff] }
  0x40   : > { %1479 = vmatmul.mubr.f32.gmra.mrb[8].mxu0 %v183_v42  ;;  %1575 = vmatmul.mubr.f32.gmra.mrb[8].mxu1 %v247_v43  ;;  %v215_v42 = vld [vmem:[%s1779_s7 + $0x148] sm:$0xff] }
  0x41   : > { %1481 = vmatprep.mubr.f32.mxu0 %v184_v44  ;;  %1577 = vmatprep.mubr.f32.mxu1 %v248_v45  ;;  %v279_v43 = vld [vmem:[%s1779_s7 + $0x348] sm:$0xff]  ;;  %v216_v44 = vld [vmem:[%s1779_s7 + $0x150] sm:$0xff] }
  0x42   : > { %v280_v45 = vld [vmem:[%s1779_s7 + $0x350] sm:$0xff] }
  0x44   : > { %1482 = vmatmul.mubr.f32.gmra.mrb[10].mxu0 %v185_v46  ;;  %1578 = vmatmul.mubr.f32.gmra.mrb[10].mxu1 %v249_v47  ;;  %v217_v46 = vld [vmem:[%s1779_s7 + $0x158] sm:$0xff] }
  0x45   : > { %1484 = vmatprep.mubr.f32.mxu0 %v186_v48  ;;  %1580 = vmatprep.mubr.f32.mxu1 %v250_v49  ;;  %v281_v47 = vld [vmem:[%s1779_s7 + $0x358] sm:$0xff]  ;;  %v218_v48 = vld [vmem:[%s1779_s7 + $0x160] sm:$0xff] }
  0x46   : > { %v282_v49 = vld [vmem:[%s1779_s7 + $0x360] sm:$0xff] }
  0x48   : > { %1485 = vmatmul.mubr.f32.gmra.mrb[12].mxu0 %v187_v50  ;;  %1581 = vmatmul.mubr.f32.gmra.mrb[12].mxu1 %v251_v51  ;;  %v219_v50 = vld [vmem:[%s1779_s7 + $0x168] sm:$0xff] }
  0x49   : > { %1487 = vmatprep.mubr.f32.mxu0 %v188_v52  ;;  %1583 = vmatprep.mubr.f32.mxu1 %v252_v53  ;;  %v283_v51 = vld [vmem:[%s1779_s7 + $0x368] sm:$0xff]  ;;  %v220_v52 = vld [vmem:[%s1779_s7 + $0x170] sm:$0xff] }
  0x4a   : > { %v284_v53 = vld [vmem:[%s1779_s7 + $0x370] sm:$0xff] }
  0x4c   : > { %1488 = vmatmul.mubr.f32.gmra.mrb[14].mxu0 %v189_v54  ;;  %1584 = vmatmul.mubr.f32.gmra.mrb[14].mxu1 %v253_v55  ;;  %v221_v54 = vld [vmem:[%s1779_s7 + $0x178] sm:$0xff] }
  0x4d   : > { %1490 = vmatprep.mubr.f32.mxu0 %v190_v56  ;;  %1586 = vmatprep.mubr.f32.mxu1 %v254_v57  ;;  %v285_v55 = vld [vmem:[%s1779_s7 + $0x378] sm:$0xff]  ;;  %v222_v56 = vld [vmem:[%s1779_s7 + $0x180] sm:$0xff] }
  0x4e   : > { %v286_v57 = vld [vmem:[%s1779_s7 + $0x380] sm:$0xff] }
  0x50   : > { %1491 = vmatmul.mubr.f32.gmra.mrb[16].mxu0 %v191_v58  ;;  %1587 = vmatmul.mubr.f32.gmra.mrb[16].mxu1 %v255_v59  ;;  %v223_v58 = vld [vmem:[%s1779_s7 + $0x188] sm:$0xff] }
  0x51   : > { %1493 = vmatprep.mubr.f32.mxu0 %v192_v60  ;;  %1589 = vmatprep.mubr.f32.mxu1 %v256_v61  ;;  %v287_v59 = vld [vmem:[%s1779_s7 + $0x388] sm:$0xff]  ;;  %v224_v60 = vld [vmem:[%s1779_s7 + $0x190] sm:$0xff] }
  0x52   : > { %v288_v61 = vld [vmem:[%s1779_s7 + $0x390] sm:$0xff] }
  0x54   : > { %1494 = vmatmul.mubr.f32.gmra.mrb[18].mxu0 %v193_v62  ;;  %1590 = vmatmul.mubr.f32.gmra.mrb[18].mxu1 %v257_v63  ;;  %v225_v62 = vld [vmem:[%s1779_s7 + $0x198] sm:$0xff] }
  0x55   : > { %1496 = vmatprep.mubr.f32.mxu0 %v194_v0  ;;  %1592 = vmatprep.mubr.f32.mxu1 %v258_v1  ;;  %v289_v63 = vld [vmem:[%s1779_s7 + $0x398] sm:$0xff]  ;;  %v226_v0 = vld [vmem:[%s1779_s7 + $0x1a0] sm:$0xff] }
  0x56   : > { %v290_v1 = vld [vmem:[%s1779_s7 + $0x3a0] sm:$0xff] }
  0x58   : > { %1497 = vmatmul.mubr.f32.gmra.mrb[20].mxu0 %v195_v2  ;;  %1593 = vmatmul.mubr.f32.gmra.mrb[20].mxu1 %v259_v3  ;;  %v227_v2 = vld [vmem:[%s1779_s7 + $0x1a8] sm:$0xff] }
  0x59   : > { %1499 = vmatprep.mubr.f32.mxu0 %v196_v4  ;;  %1595 = vmatprep.mubr.f32.mxu1 %v260_v5  ;;  %v291_v3 = vld [vmem:[%s1779_s7 + $0x3a8] sm:$0xff]  ;;  %v228_v4 = vld [vmem:[%s1779_s7 + $0x1b0] sm:$0xff] }
  0x5a   : > { %v292_v5 = vld [vmem:[%s1779_s7 + $0x3b0] sm:$0xff] }
  0x5c   : > { %1500 = vmatmul.mubr.f32.gmra.mrb[22].mxu0 %v197_v6  ;;  %1596 = vmatmul.mubr.f32.gmra.mrb[22].mxu1 %v261_v7  ;;  %v229_v6 = vld [vmem:[%s1779_s7 + $0x1b8] sm:$0xff] }
  0x5d   : > { %1502 = vmatprep.mubr.f32.mxu0 %v198_v8  ;;  %1598 = vmatprep.mubr.f32.mxu1 %v262_v9  ;;  %v293_v7 = vld [vmem:[%s1779_s7 + $0x3b8] sm:$0xff]  ;;  %v230_v8 = vld [vmem:[%s1779_s7 + $0x1c0] sm:$0xff] }
  0x5e   : > { %v294_v9 = vld [vmem:[%s1779_s7 + $0x3c0] sm:$0xff] }
  0x60   : > { %1503 = vmatmul.mubr.f32.gmra.mrb[24].mxu0 %v199_v10  ;;  %1599 = vmatmul.mubr.f32.gmra.mrb[24].mxu1 %v263_v11  ;;  %v231_v10 = vld [vmem:[%s1779_s7 + $0x1c8] sm:$0xff] }
  0x61   : > { %1505 = vmatprep.mubr.f32.mxu0 %v200_v12  ;;  %1601 = vmatprep.mubr.f32.mxu1 %v264_v13  ;;  %v295_v11 = vld [vmem:[%s1779_s7 + $0x3c8] sm:$0xff]  ;;  %v232_v12 = vld [vmem:[%s1779_s7 + $0x1d0] sm:$0xff] }
  0x62   : > { %v296_v13 = vld [vmem:[%s1779_s7 + $0x3d0] sm:$0xff] }
  0x64   : > { %1506 = vmatmul.mubr.f32.gmra.mrb[26].mxu0 %v201_v14  ;;  %1602 = vmatmul.mubr.f32.gmra.mrb[26].mxu1 %v265_v15  ;;  %v233_v14 = vld [vmem:[%s1779_s7 + $0x1d8] sm:$0xff] }
  0x65   : > { %1508 = vmatprep.mubr.f32.mxu0 %v202_v16  ;;  %1604 = vmatprep.mubr.f32.mxu1 %v266_v17  ;;  %v297_v15 = vld [vmem:[%s1779_s7 + $0x3d8] sm:$0xff]  ;;  %v234_v16 = vld [vmem:[%s1779_s7 + $0x1e0] sm:$0xff] }
  0x66   : > { %v298_v17 = vld [vmem:[%s1779_s7 + $0x3e0] sm:$0xff] }
  0x68   : > { %1509 = vmatmul.mubr.f32.gmra.mrb[28].mxu0 %v203_v18  ;;  %1605 = vmatmul.mubr.f32.gmra.mrb[28].mxu1 %v267_v19  ;;  %v235_v18 = vld [vmem:[%s1779_s7 + $0x1e8] sm:$0xff] }
  0x69   : > { %1511 = vmatprep.mubr.f32.mxu0 %v204_v20  ;;  %1607 = vmatprep.mubr.f32.mxu1 %v268_v21  ;;  %v299_v19 = vld [vmem:[%s1779_s7 + $0x3e8] sm:$0xff]  ;;  %v236_v20 = vld [vmem:[%s1779_s7 + $0x1f0] sm:$0xff] }
  0x6a   : > { %v300_v21 = vld [vmem:[%s1779_s7 + $0x3f0] sm:$0xff] }
  0x6c   : > { %1512 = vmatmul.mubr.f32.gmra.mrb[30].mxu0 %v205_v22  ;;  %1608 = vmatmul.mubr.f32.gmra.mrb[30].mxu1 %v269_v23  ;;  %v237_v22 = vld [vmem:[%s1779_s7 + $0x1f8] sm:$0xff] }
  0x6d   : > { %1514 = vmatprep.mubr.f32.mxu0 %v206_v24  ;;  %1610 = vmatprep.mubr.f32.mxu1 %v270_v25  ;;  %v301_v23 = vld [vmem:[%s1779_s7 + $0x3f8] sm:$0xff] }
  0x70   : > { %1515 = vmatmul.mubr.f32.gmra.mrb[32].mxu0 %v207_v26  ;;  %1611 = vmatmul.mubr.f32.gmra.mrb[32].mxu1 %v271_v27 }
  0x71   : > { %1517 = vmatprep.mubr.f32.mxu0 %v208_v28  ;;  %1613 = vmatprep.mubr.f32.mxu1 %v272_v29 }
  0x74   : > { %1518 = vmatmul.mubr.f32.gmra.mrb[34].mxu0 %v209_v30  ;;  %1614 = vmatmul.mubr.f32.gmra.mrb[34].mxu1 %v273_v31 }
  0x75   : > { %1520 = vmatprep.mubr.f32.mxu0 %v210_v32  ;;  %1616 = vmatprep.mubr.f32.mxu1 %v274_v33 }
  0x78   : > { %1521 = vmatmul.mubr.f32.gmra.mrb[36].mxu0 %v211_v34  ;;  %1617 = vmatmul.mubr.f32.gmra.mrb[36].mxu1 %v275_v35 }
  0x79   : > { %1523 = vmatprep.mubr.f32.mxu0 %v212_v36  ;;  %1619 = vmatprep.mubr.f32.mxu1 %v276_v37 }
  0x7c   : > { %1524 = vmatmul.mubr.f32.gmra.mrb[38].mxu0 %v213_v38  ;;  %1620 = vmatmul.mubr.f32.gmra.mrb[38].mxu1 %v277_v39 }
  0x7d   : > { %1526 = vmatprep.mubr.f32.mxu0 %v214_v40  ;;  %1622 = vmatprep.mubr.f32.mxu1 %v278_v41 }
  0x80   : > { %1527 = vmatmul.mubr.f32.gmra.mrb[40].mxu0 %v215_v42  ;;  %1623 = vmatmul.mubr.f32.gmra.mrb[40].mxu1 %v279_v43 }
  0x81   : > { %1529 = vmatprep.mubr.f32.mxu0 %v216_v44  ;;  %1625 = vmatprep.mubr.f32.mxu1 %v280_v45 }
  0x84   : > { %1530 = vmatmul.mubr.f32.gmra.mrb[42].mxu0 %v217_v46  ;;  %1626 = vmatmul.mubr.f32.gmra.mrb[42].mxu1 %v281_v47 }
  0x85   : > { %1532 = vmatprep.mubr.f32.mxu0 %v218_v48  ;;  %1628 = vmatprep.mubr.f32.mxu1 %v282_v49 }
  0x88   : > { %1533 = vmatmul.mubr.f32.gmra.mrb[44].mxu0 %v219_v50  ;;  %1629 = vmatmul.mubr.f32.gmra.mrb[44].mxu1 %v283_v51 }
  0x89   : > { %1535 = vmatprep.mubr.f32.mxu0 %v220_v52  ;;  %1631 = vmatprep.mubr.f32.mxu1 %v284_v53 }
  0x8c   : > { %1536 = vmatmul.mubr.f32.gmra.mrb[46].mxu0 %v221_v54  ;;  %1632 = vmatmul.mubr.f32.gmra.mrb[46].mxu1 %v285_v55 }
  0x8d   : > { %1538 = vmatprep.mubr.f32.mxu0 %v222_v56  ;;  %1634 = vmatprep.mubr.f32.mxu1 %v286_v57 }
  0x90   : > { %1539 = vmatmul.mubr.f32.gmra.mrb[48].mxu0 %v223_v58  ;;  %1635 = vmatmul.mubr.f32.gmra.mrb[48].mxu1 %v287_v59 }
  0x91   : > { %1541 = vmatprep.mubr.f32.mxu0 %v224_v60  ;;  %1637 = vmatprep.mubr.f32.mxu1 %v288_v61 }
  0x94   : > { %1542 = vmatmul.mubr.f32.gmra.mrb[50].mxu0 %v225_v62  ;;  %1638 = vmatmul.mubr.f32.gmra.mrb[50].mxu1 %v289_v63 }
  0x95   : > { %1544 = vmatprep.mubr.f32.mxu0 %v226_v0  ;;  %1640 = vmatprep.mubr.f32.mxu1 %v290_v1 }
  0x98   : > { %1545 = vmatmul.mubr.f32.gmra.mrb[52].mxu0 %v227_v2  ;;  %1641 = vmatmul.mubr.f32.gmra.mrb[52].mxu1 %v291_v3 }
  0x99   : > { %1547 = vmatprep.mubr.f32.mxu0 %v228_v4  ;;  %1643 = vmatprep.mubr.f32.mxu1 %v292_v5 }
  0x9c   : > { %1548 = vmatmul.mubr.f32.gmra.mrb[54].mxu0 %v229_v6  ;;  %1644 = vmatmul.mubr.f32.gmra.mrb[54].mxu1 %v293_v7 }
  0x9d   : > { %1550 = vmatprep.mubr.f32.mxu0 %v230_v8  ;;  %1646 = vmatprep.mubr.f32.mxu1 %v294_v9 }
  0xa0   : > { %1551 = vmatmul.mubr.f32.gmra.mrb[56].mxu0 %v231_v10  ;;  %1647 = vmatmul.mubr.f32.gmra.mrb[56].mxu1 %v295_v11 }
  0xa1   : > { %1553 = vmatprep.mubr.f32.mxu0 %v232_v12  ;;  %1649 = vmatprep.mubr.f32.mxu1 %v296_v13 }
  0xa4   : > { %1554 = vmatmul.mubr.f32.gmra.mrb[58].mxu0 %v233_v14  ;;  %1650 = vmatmul.mubr.f32.gmra.mrb[58].mxu1 %v297_v15 }
  0xa5   : > { %1556 = vmatprep.mubr.f32.mxu0 %v234_v16  ;;  %1652 = vmatprep.mubr.f32.mxu1 %v298_v17 }
  0xa8   : > { %1557 = vmatmul.mubr.f32.gmra.mrb[60].mxu0 %v235_v18  ;;  %1653 = vmatmul.mubr.f32.gmra.mrb[60].mxu1 %v299_v19 }
  0xa9   : > { %1559 = vmatprep.mubr.f32.mxu0 %v236_v20  ;;  %1655 = vmatprep.mubr.f32.mxu1 %v300_v21 }
  0xac   : > { %1560 = vmatmul.mubr.f32.gmra.mrb[62].mxu0 %v237_v22  ;;  %1656 = vmatmul.mubr.f32.gmra.mrb[62].mxu1 %v301_v23 }
 0x103   : > { %v1933_v24 = vpop.f32.mrb[0].mxu0  ;;  %v1935_v25 = vpop.f32.mrb[0].mxu1 }
 0x104   : > { %v1937_v26 = vpop.f32.mrb[1].mxu0  ;;  %v1939_v27 = vpop.f32.mrb[1].mxu1 }
 0x107   : > { %v1941_v28 = vpop.f32.mrb[2].mxu0  ;;  %v1943_v29 = vpop.f32.mrb[2].mxu1 }
 0x108   : > { %v1945_v30 = vpop.f32.mrb[3].mxu0  ;;  %v1947_v31 = vpop.f32.mrb[3].mxu1 }
 0x10b   : > { %v1949_v32 = vpop.f32.mrb[4].mxu0  ;;  %v1951_v33 = vpop.f32.mrb[4].mxu1 }
 0x10c   : > { %v1953_v34 = vpop.f32.mrb[5].mxu0  ;;  %v1955_v35 = vpop.f32.mrb[5].mxu1 }
 0x10f   : > { %v1957_v36 = vpop.f32.mrb[6].mxu0  ;;  %v1959_v37 = vpop.f32.mrb[6].mxu1 }
 0x110   : > { %v1961_v38 = vpop.f32.mrb[7].mxu0  ;;  %v1963_v39 = vpop.f32.mrb[7].mxu1 }
 0x113   : > { %v1965_v40 = vpop.f32.mrb[8].mxu0  ;;  %v1967_v41 = vpop.f32.mrb[8].mxu1 }
 0x114   : > { %v1969_v42 = vpop.f32.mrb[9].mxu0  ;;  %v1971_v43 = vpop.f32.mrb[9].mxu1 }
 0x117   : > { %v1973_v44 = vpop.f32.mrb[10].mxu0  ;;  %v1975_v45 = vpop.f32.mrb[10].mxu1 }
 0x118   : > { %v1977_v46 = vpop.f32.mrb[11].mxu0  ;;  %v1979_v47 = vpop.f32.mrb[11].mxu1 }
 0x11b   : > { %v1981_v48 = vpop.f32.mrb[12].mxu0  ;;  %v1983_v49 = vpop.f32.mrb[12].mxu1 }
 0x11c   : > { %v1985_v50 = vpop.f32.mrb[13].mxu0  ;;  %v1987_v51 = vpop.f32.mrb[13].mxu1 }
 0x11f   : > { %v1989_v52 = vpop.f32.mrb[14].mxu0  ;;  %v1991_v53 = vpop.f32.mrb[14].mxu1 }
 0x120   : > { %v1993_v54 = vpop.f32.mrb[15].mxu0  ;;  %v1995_v55 = vpop.f32.mrb[15].mxu1 }
 0x123   : > { %v1997_v56 = vpop.f32.mrb[16].mxu0  ;;  %v1999_v57 = vpop.f32.mrb[16].mxu1 }
 0x124   : > { %v2001_v58 = vpop.f32.mrb[17].mxu0  ;;  %v2003_v59 = vpop.f32.mrb[17].mxu1 }
 0x127   : > { %v2005_v60 = vpop.f32.mrb[18].mxu0  ;;  %v2007_v61 = vpop.f32.mrb[18].mxu1 }
 0x128   : > { %v2009_v62 = vpop.f32.mrb[19].mxu0  ;;  %v2011_v63 = vpop.f32.mrb[19].mxu1 }
 0x12b   : > { %v2013_v0 = vpop.f32.mrb[20].mxu0  ;;  %v2015_v1 = vpop.f32.mrb[20].mxu1 }
 0x12c   : > { %v2017_v2 = vpop.f32.mrb[21].mxu0  ;;  %v2019_v3 = vpop.f32.mrb[21].mxu1 }
 0x12f   : > { %v2021_v4 = vpop.f32.mrb[22].mxu0  ;;  %v2023_v5 = vpop.f32.mrb[22].mxu1 }
 0x130   : > { %v2025_v6 = vpop.f32.mrb[23].mxu0  ;;  %v2027_v7 = vpop.f32.mrb[23].mxu1 }
 0x133   : > { %v2029_v8 = vpop.f32.mrb[24].mxu0  ;;  %v2031_v9 = vpop.f32.mrb[24].mxu1 }
 0x134   : > { %2208 = vst [vmem:[#allocation2_spill] sm:$0xff] %v2031_v9  ;;  %v2033_v10 = vpop.f32.mrb[25].mxu0  ;;  %v2035_v11 = vpop.f32.mrb[25].mxu1 }
 0x135   : > { %2209 = vst [vmem:[#allocation3_spill] sm:$0xff] %v2035_v11 }
 0x137   : > { %v2037_v12 = vpop.f32.mrb[26].mxu0  ;;  %v2039_v13 = vpop.f32.mrb[26].mxu1 }
 0x138   : > { %2210 = vst [vmem:[#allocation4_spill] sm:$0xff] %v2037_v12  ;;  %2211 = vst [vmem:[#allocation5_spill] sm:$0xff] %v2039_v13  ;;  %v2041_v14 = vpop.f32.mrb[27].mxu0  ;;  %v2043_v15 = vpop.f32.mrb[27].mxu1 }
 0x139   : > { %2212 = vst [vmem:[#allocation6_spill] sm:$0xff] %v2041_v14  ;;  %2213 = vst [vmem:[#allocation7_spill] sm:$0xff] %v2043_v15 }
 0x13b   : > { %v2045_v16 = vpop.f32.mrb[28].mxu0  ;;  %v2047_v17 = vpop.f32.mrb[28].mxu1 }
 0x13c   : > { %2214 = vst [vmem:[#allocation8_spill] sm:$0xff] %v2045_v16  ;;  %2215 = vst [vmem:[#allocation9_spill] sm:$0xff] %v2047_v17  ;;  %v2049_v18 = vpop.f32.mrb[29].mxu0  ;;  %v2051_v19 = vpop.f32.mrb[29].mxu1 }
 0x13d   : > { %2216 = vst [vmem:[#allocation10_spill] sm:$0xff] %v2049_v18  ;;  %2217 = vst [vmem:[#allocation11_spill] sm:$0xff] %v2051_v19 }
 0x13f   : > { %v2055_v20 = vpop.f32.mrb[30].mxu0  ;;  %v2057_v21 = vpop.f32.mrb[30].mxu1 }
 0x140   : > { %2218 = vst [vmem:[#allocation12_spill] sm:$0xff] %v2055_v20  ;;  %2219 = vst [vmem:[#allocation13_spill] sm:$0xff] %v2057_v21  ;;  %v2059_v22 = vpop.f32.mrb[31].mxu0  ;;  %v2061_v23 = vpop.f32.mrb[31].mxu1  ;;  %v2069_v21 = vld [vmem:[%s2206_s2] ss:$0 sm:$0xff] }
 0x141   : > { %2220 = vst [vmem:[#allocation14_spill] sm:$0xff] %v2059_v22  ;;  %2221 = vst [vmem:[#allocation15_spill] sm:$0xff] %v2061_v23 }
 0x143   : > { %v1516_v15 = vpop.f32.mrb[32].mxu0  ;;  %v1612_v13 = vpop.f32.mrb[32].mxu1 }
 0x144   : > { %v1024_v16 = vmax.f32 %v1933_v24, %v1516_v15  ;;  %v544_v17 = vpop.f32.mrb[33].mxu0  ;;  %v864_v18 = vpop.f32.mrb[33].mxu1 }
 0x145   : > { %v1023_v19 = vmax.f32 %v1937_v26, %v544_v17 }
 0x146   : > { %v1056_v14 = vmax.f32 %v1024_v16, %v1935_v25 }
 0x147   : > { %v1519_v22 = vpop.f32.mrb[34].mxu0  ;;  %v1055_v23 = vmax.f32 %v1023_v19, %v1939_v27  ;;  %v1615_v20 = vpop.f32.mrb[34].mxu1 }
 0x148   : > { %v1088_v12 = vmax.f32 %v1056_v14, %v1612_v13  ;;  %v1026_v24 = vmax.f32 %v1941_v28, %v1519_v22  ;;  %v554_v15 = vpop.f32.mrb[35].mxu0  ;;  %v874_v11 = vpop.f32.mrb[35].mxu1 }
 0x149   : > { %v1087_v9 = vmax.f32 %v1055_v23, %v864_v18  ;;  %v1025_v26 = vmax.f32 %v1945_v30, %v554_v15 }
 0x14a   : > { %v1127_v25 = vadd.f32 %v2069_v21, %v1088_v12  ;;  %v1058_v16 = vmax.f32 %v1026_v24, %v1943_v29 }
 0x14b   : > { %v1126_v27 = vadd.f32 %v2069_v21, %v1087_v9  ;;  %v1522_v13 = vpop.f32.mrb[36].mxu0  ;;  %v1057_v28 = vmax.f32 %v1025_v26, %v1947_v31  ;;  %v1618_v14 = vpop.f32.mrb[36].mxu1 }
 0x14c   : > { %v1159_v17 = vmax.f32 %v1127_v25, 0.0  ;;  %v1090_v18 = vmax.f32 %v1058_v16, %v1615_v20  ;;  %v1028_v30 = vmax.f32 %v1949_v32, %v1522_v13  ;;  %v564_v12 = vpop.f32.mrb[37].mxu0  ;;  %v884_v19 = vpop.f32.mrb[37].mxu1 }
 0x14d   : > { %v1158_v29 = vmax.f32 %v1126_v27, 0.0  ;;  %v1089_v22 = vmax.f32 %v1057_v28, %v874_v11  ;;  %v1027_v23 = vmax.f32 %v1953_v34, %v564_v12 }
 0x14e   : > { %1191 = vst [vmem:[%s2079_s4 + $0x8] sm:$0xff] %v1159_v17  ;;  %v1129_v24 = vadd.f32 %v2069_v21, %v1090_v18  ;;  %v1060_v9 = vmax.f32 %v1028_v30, %v1951_v33 }
 0x14f   : > { %1190 = vst [vmem:[%s2079_s4] sm:$0xff] %v1158_v29  ;;  %v1128_v31 = vadd.f32 %v2069_v21, %v1089_v22  ;;  %v1525_v15 = vpop.f32.mrb[38].mxu0  ;;  %v1059_v20 = vmax.f32 %v1027_v23, %v1955_v35  ;;  %v1621_v32 = vpop.f32.mrb[38].mxu1 }
 0x150   : > { %v1161_v26 = vmax.f32 %v1129_v24, 0.0  ;;  %v1092_v25 = vmax.f32 %v1060_v9, %v1618_v14  ;;  %v1030_v11 = vmax.f32 %v1957_v36, %v1525_v15  ;;  %v574_v16 = vpop.f32.mrb[39].mxu0  ;;  %v894_v34 = vpop.f32.mrb[39].mxu1 }
 0x151   : > { %v1160_v27 = vmax.f32 %v1128_v31, 0.0  ;;  %v1091_v13 = vmax.f32 %v1059_v20, %v884_v19  ;;  %v1029_v28 = vmax.f32 %v1961_v38, %v574_v16 }
 0x152   : > { %1193 = vst [vmem:[%s2079_s4 + $0x18] sm:$0xff] %v1161_v26  ;;  %v1131_v33 = vadd.f32 %v2069_v21, %v1092_v25  ;;  %v1062_v17 = vmax.f32 %v1030_v11, %v1959_v37 }
 0x153   : > { %1192 = vst [vmem:[%s2079_s4 + $0x10] sm:$0xff] %v1160_v27  ;;  %v1130_v35 = vadd.f32 %v2069_v21, %v1091_v13  ;;  %v1528_v18 = vpop.f32.mrb[40].mxu0  ;;  %v1061_v14 = vmax.f32 %v1029_v28, %v1963_v39  ;;  %v1624_v36 = vpop.f32.mrb[40].mxu1 }
 0x154   : > { %v1163_v30 = vmax.f32 %v1131_v33, 0.0  ;;  %v1094_v12 = vmax.f32 %v1062_v17, %v1621_v32  ;;  %v1032_v19 = vmax.f32 %v1965_v40, %v1528_v18  ;;  %v584_v29 = vpop.f32.mrb[41].mxu0  ;;  %v904_v38 = vpop.f32.mrb[41].mxu1 }
 0x155   : > { %v1162_v22 = vmax.f32 %v1130_v35, 0.0  ;;  %v1093_v23 = vmax.f32 %v1061_v14, %v894_v34  ;;  %v1031_v24 = vmax.f32 %v1969_v42, %v584_v29 }
 0x156   : > { %1195 = vst [vmem:[%s2079_s4 + $0x28] sm:$0xff] %v1163_v30  ;;  %v1133_v37 = vadd.f32 %v2069_v21, %v1094_v12  ;;  %v1064_v9 = vmax.f32 %v1032_v19, %v1967_v41 }
 0x157   : > { %1194 = vst [vmem:[%s2079_s4 + $0x20] sm:$0xff] %v1162_v22  ;;  %v1132_v39 = vadd.f32 %v2069_v21, %v1093_v23  ;;  %v1531_v31 = vpop.f32.mrb[42].mxu0  ;;  %v1063_v15 = vmax.f32 %v1031_v24, %v1971_v43  ;;  %v1627_v40 = vpop.f32.mrb[42].mxu1 }
 0x158   : > { %v1165_v20 = vmax.f32 %v1133_v37, 0.0  ;;  %v1096_v32 = vmax.f32 %v1064_v9, %v1624_v36  ;;  %v1034_v26 = vmax.f32 %v1973_v44, %v1531_v31  ;;  %v594_v25 = vpop.f32.mrb[43].mxu0  ;;  %v914_v42 = vpop.f32.mrb[43].mxu1 }
 0x159   : > { %v1164_v11 = vmax.f32 %v1132_v39, 0.0  ;;  %v1095_v16 = vmax.f32 %v1063_v15, %v904_v38  ;;  %v1033_v34 = vmax.f32 %v1977_v46, %v594_v25 }
 0x15a   : > { %1197 = vst [vmem:[%s2079_s4 + $0x38] sm:$0xff] %v1165_v20  ;;  %v1135_v41 = vadd.f32 %v2069_v21, %v1096_v32  ;;  %v1066_v27 = vmax.f32 %v1034_v26, %v1975_v45 }
 0x15b   : > { %1196 = vst [vmem:[%s2079_s4 + $0x30] sm:$0xff] %v1164_v11  ;;  %v1134_v43 = vadd.f32 %v2069_v21, %v1095_v16  ;;  %v1534_v13 = vpop.f32.mrb[44].mxu0  ;;  %v1065_v28 = vmax.f32 %v1033_v34, %v1979_v47  ;;  %v1630_v44 = vpop.f32.mrb[44].mxu1 }
 0x15c   : > { %v1167_v33 = vmax.f32 %v1135_v41, 0.0  ;;  %v1098_v17 = vmax.f32 %v1066_v27, %v1627_v40  ;;  %v1036_v35 = vmax.f32 %v1981_v48, %v1534_v13  ;;  %v604_v18 = vpop.f32.mrb[45].mxu0  ;;  %v924_v46 = vpop.f32.mrb[45].mxu1 }
 0x15d   : > { %v1166_v14 = vmax.f32 %v1134_v43, 0.0  ;;  %v1097_v36 = vmax.f32 %v1065_v28, %v914_v42  ;;  %v1035_v30 = vmax.f32 %v1985_v50, %v604_v18 }
 0x15e   : > { %1199 = vst [vmem:[%s2079_s4 + $0x48] sm:$0xff] %v1167_v33  ;;  %v1137_v45 = vadd.f32 %v2069_v21, %v1098_v17  ;;  %v1068_v12 = vmax.f32 %v1036_v35, %v1983_v49 }
 0x15f   : > { %1198 = vst [vmem:[%s2079_s4 + $0x40] sm:$0xff] %v1166_v14  ;;  %v1136_v47 = vadd.f32 %v2069_v21, %v1097_v36  ;;  %v1537_v19 = vpop.f32.mrb[46].mxu0  ;;  %v1067_v29 = vmax.f32 %v1035_v30, %v1987_v51  ;;  %v1633_v48 = vpop.f32.mrb[46].mxu1 }
 0x160   : > { %v1169_v38 = vmax.f32 %v1137_v45, 0.0  ;;  %v1100_v22 = vmax.f32 %v1068_v12, %v1630_v44  ;;  %v1038_v23 = vmax.f32 %v1989_v52, %v1537_v19  ;;  %v614_v24 = vpop.f32.mrb[47].mxu0  ;;  %v934_v50 = vpop.f32.mrb[47].mxu1 }
 0x161   : > { %v1168_v37 = vmax.f32 %v1136_v47, 0.0  ;;  %v1099_v9 = vmax.f32 %v1067_v29, %v924_v46  ;;  %v1037_v39 = vmax.f32 %v1993_v54, %v614_v24 }
 0x162   : > { %1201 = vst [vmem:[%s2079_s4 + $0x58] sm:$0xff] %v1169_v38  ;;  %v1139_v49 = vadd.f32 %v2069_v21, %v1100_v22  ;;  %v1070_v31 = vmax.f32 %v1038_v23, %v1991_v53 }
 0x163   : > { %1200 = vst [vmem:[%s2079_s4 + $0x50] sm:$0xff] %v1168_v37  ;;  %v1138_v51 = vadd.f32 %v2069_v21, %v1099_v9  ;;  %v1540_v15 = vpop.f32.mrb[48].mxu0  ;;  %v1069_v40 = vmax.f32 %v1037_v39, %v1995_v55  ;;  %v1636_v52 = vpop.f32.mrb[48].mxu1 }
 0x164   : > { %v1171_v20 = vmax.f32 %v1139_v49, 0.0  ;;  %v1102_v32 = vmax.f32 %v1070_v31, %v1633_v48  ;;  %v1040_v26 = vmax.f32 %v1997_v56, %v1540_v15  ;;  %v624_v25 = vpop.f32.mrb[49].mxu0  ;;  %v944_v54 = vpop.f32.mrb[49].mxu1 }
 0x165   : > { %v1170_v42 = vmax.f32 %v1138_v51, 0.0  ;;  %v1101_v11 = vmax.f32 %v1069_v40, %v934_v50  ;;  %v1039_v16 = vmax.f32 %v2001_v58, %v624_v25 }
 0x166   : > { %1203 = vst [vmem:[%s2079_s4 + $0x68] sm:$0xff] %v1171_v20  ;;  %v1141_v53 = vadd.f32 %v2069_v21, %v1102_v32  ;;  %v1072_v34 = vmax.f32 %v1040_v26, %v1999_v57 }
 0x167   : > { %1202 = vst [vmem:[%s2079_s4 + $0x60] sm:$0xff] %v1170_v42  ;;  %v1140_v55 = vadd.f32 %v2069_v21, %v1101_v11  ;;  %v1543_v41 = vpop.f32.mrb[50].mxu0  ;;  %v1071_v27 = vmax.f32 %v1039_v16, %v2003_v59  ;;  %v1639_v56 = vpop.f32.mrb[50].mxu1  ;;  %v2222_v42 = vld [vmem:[#allocation2_spill] sm:$0xff] }
 0x168   : > { %v1173_v43 = vmax.f32 %v1141_v53, 0.0  ;;  %v1104_v13 = vmax.f32 %v1072_v34, %v1636_v52  ;;  %v1042_v28 = vmax.f32 %v2005_v60, %v1543_v41  ;;  %v634_v44 = vpop.f32.mrb[51].mxu0  ;;  %v954_v58 = vpop.f32.mrb[51].mxu1  ;;  %v2223_v53 = vld [vmem:[#allocation3_spill] sm:$0xff] }
 0x169   : > { %v1172_v33 = vmax.f32 %v1140_v55, 0.0  ;;  %v1103_v17 = vmax.f32 %v1071_v27, %v944_v54  ;;  %v1041_v35 = vmax.f32 %v2009_v62, %v634_v44  ;;  %v2224_v27 = vld [vmem:[#allocation4_spill] sm:$0xff]  ;;  %v2225_v44 = vld [vmem:[#allocation6_spill] sm:$0xff] }
 0x16a   : > { %1205 = vst [vmem:[%s2079_s4 + $0x78] sm:$0xff] %v1173_v43  ;;  %v1143_v57 = vadd.f32 %v2069_v21, %v1104_v13  ;;  %v1074_v18 = vmax.f32 %v1042_v28, %v2007_v61 }
 0x16b   : > { %1204 = vst [vmem:[%s2079_s4 + $0x70] sm:$0xff] %v1172_v33  ;;  %v1142_v59 = vadd.f32 %v2069_v21, %v1103_v17  ;;  %v1546_v46 = vpop.f32.mrb[52].mxu0  ;;  %v1073_v14 = vmax.f32 %v1041_v35, %v2011_v63  ;;  %v1642_v60 = vpop.f32.mrb[52].mxu1  ;;  %v2226_v17 = vld [vmem:[#allocation5_spill] sm:$0xff] }
 0x16c   : > { %v1175_v36 = vmax.f32 %v1143_v57, 0.0  ;;  %v1106_v30 = vmax.f32 %v1074_v18, %v1639_v56  ;;  %v1044_v45 = vmax.f32 %v2013_v0, %v1546_v46  ;;  %v644_v12 = vpop.f32.mrb[53].mxu0  ;;  %v964_v62 = vpop.f32.mrb[53].mxu1 }
 0x16d   : > { %v1174_v47 = vmax.f32 %v1142_v59, 0.0  ;;  %v1105_v19 = vmax.f32 %v1073_v14, %v954_v58  ;;  %v1043_v29 = vmax.f32 %v2017_v2, %v644_v12  ;;  %v2227_v59 = vld [vmem:[#allocation7_spill] sm:$0xff] }
 0x16e   : > { %1207 = vst [vmem:[%s2079_s4 + $0x88] sm:$0xff] %v1175_v36  ;;  %v1145_v61 = vadd.f32 %v2069_v21, %v1106_v30  ;;  %v1076_v48 = vmax.f32 %v1044_v45, %v2015_v1  ;;  %v2228_v30 = vld [vmem:[#allocation8_spill] sm:$0xff] }
 0x16f   : > { %1206 = vst [vmem:[%s2079_s4 + $0x80] sm:$0xff] %v1174_v47  ;;  %v1144_v63 = vadd.f32 %v2069_v21, %v1105_v19  ;;  %v1549_v38 = vpop.f32.mrb[54].mxu0  ;;  %v1075_v22 = vmax.f32 %v1043_v29, %v2019_v3  ;;  %v1645_v0 = vpop.f32.mrb[54].mxu1  ;;  %v2229_v29 = vld [vmem:[#allocation10_spill] sm:$0xff] }
 0x170   : > { %v1177_v23 = vmax.f32 %v1145_v61, 0.0  ;;  %v1108_v24 = vmax.f32 %v1076_v48, %v1642_v60  ;;  %v1046_v50 = vmax.f32 %v2021_v4, %v1549_v38  ;;  %v654_v37 = vpop.f32.mrb[55].mxu0  ;;  %v974_v2 = vpop.f32.mrb[55].mxu1 }
 0x171   : > { %v1176_v9 = vmax.f32 %v1144_v63, 0.0  ;;  %v1107_v39 = vmax.f32 %v1075_v22, %v964_v62  ;;  %v1045_v49 = vmax.f32 %v2025_v6, %v654_v37  ;;  %v2230_v63 = vld [vmem:[#allocation9_spill] sm:$0xff] }
 0x172   : > { %1209 = vst [vmem:[%s2079_s4 + $0x98] sm:$0xff] %v1177_v23  ;;  %v1147_v1 = vadd.f32 %v2069_v21, %v1108_v24  ;;  %v1078_v31 = vmax.f32 %v1046_v50, %v2023_v5  ;;  %v2231_v23 = vld [vmem:[#allocation11_spill] sm:$0xff] }
 0x173   : > { %1208 = vst [vmem:[%s2079_s4 + $0x90] sm:$0xff] %v1176_v9  ;;  %v1146_v3 = vadd.f32 %v2069_v21, %v1107_v39  ;;  %v1552_v51 = vpop.f32.mrb[56].mxu0  ;;  %v1077_v15 = vmax.f32 %v1045_v49, %v2027_v7  ;;  %v1648_v4 = vpop.f32.mrb[56].mxu1  ;;  %v2232_v9 = vld [vmem:[#allocation12_spill] sm:$0xff] }
 0x174   : > { %v1179_v40 = vmax.f32 %v1147_v1, 0.0  ;;  %v1110_v52 = vmax.f32 %v1078_v31, %v1645_v0  ;;  %v1048_v20 = vmax.f32 %v2029_v8, %v1552_v51  ;;  %v664_v32 = vpop.f32.mrb[57].mxu0  ;;  %v984_v6 = vpop.f32.mrb[57].mxu1  ;;  %v2233_v51 = vld [vmem:[#allocation14_spill] sm:$0xff] }
 0x175   : > { %v1178_v26 = vmax.f32 %v1146_v3, 0.0  ;;  %v1109_v25 = vmax.f32 %v1077_v15, %v974_v2  ;;  %v1047_v54 = vmax.f32 %v2033_v10, %v664_v32  ;;  %v2235_v32 = vld [vmem:[#allocation15_spill] sm:$0xff] }
 0x176   : > { %1211 = vst [vmem:[%s2079_s4 + $0xa8] sm:$0xff] %v1179_v40  ;;  %v1149_v5 = vadd.f32 %v2069_v21, %v1110_v52  ;;  %v1080_v11 = vmax.f32 %v1048_v20, %v2222_v42  ;;  %v2234_v40 = vld [vmem:[#allocation13_spill] sm:$0xff] }
 0x177   : > { %1210 = vst [vmem:[%s2079_s4 + $0xa0] sm:$0xff] %v1178_v26  ;;  %v1148_v7 = vadd.f32 %v2069_v21, %v1109_v25  ;;  %v1555_v16 = vpop.f32.mrb[58].mxu0  ;;  %v1079_v34 = vmax.f32 %v1047_v54, %v2223_v53  ;;  %v1651_v8 = vpop.f32.mrb[58].mxu1 }
 0x178   : > { %v1181_v55 = vmax.f32 %v1149_v5, 0.0  ;;  %v1112_v41 = vmax.f32 %v1080_v11, %v1648_v4  ;;  %v1050_v56 = vmax.f32 %v2224_v27, %v1555_v16  ;;  %v674_v43 = vpop.f32.mrb[59].mxu0  ;;  %v994_v10 = vpop.f32.mrb[59].mxu1 }
 0x179   : > { %v1180_v13 = vmax.f32 %v1148_v7, 0.0  ;;  %v1111_v28 = vmax.f32 %v1079_v34, %v984_v6  ;;  %v1049_v58 = vmax.f32 %v2225_v44, %v674_v43 }
 0x17a   : > { %1213 = vst [vmem:[%s2079_s4 + $0xb8] sm:$0xff] %v1181_v55  ;;  %v1151_v33 = vadd.f32 %v2069_v21, %v1112_v41  ;;  %v1082_v35 = vmax.f32 %v1050_v56, %v2226_v17 }
 0x17b   : > { %1212 = vst [vmem:[%s2079_s4 + $0xb0] sm:$0xff] %v1180_v13  ;;  %v1150_v57 = vadd.f32 %v2069_v21, %v1111_v28  ;;  %v1558_v18 = vpop.f32.mrb[60].mxu0  ;;  %v1081_v46 = vmax.f32 %v1049_v58, %v2227_v59  ;;  %v1654_v14 = vpop.f32.mrb[60].mxu1 }
 0x17c   : > { %v1183_v60 = vmax.f32 %v1151_v33, 0.0  ;;  %v1114_v36 = vmax.f32 %v1082_v35, %v1651_v8  ;;  %v1052_v45 = vmax.f32 %v2228_v30, %v1558_v18  ;;  %v684_v12 = vpop.f32.mrb[61].mxu0  ;;  %v1004_v62 = vpop.f32.mrb[61].mxu1 }
 0x17d   : > { %v1182_v47 = vmax.f32 %v1150_v57, 0.0  ;;  %v1113_v19 = vmax.f32 %v1081_v46, %v994_v10  ;;  %v1051_v61 = vmax.f32 %v2229_v29, %v684_v12 }
 0x17e   : > { %1215 = vst [vmem:[%s2079_s4 + $0xc8] sm:$0xff] %v1183_v60  ;;  %v1153_v48 = vadd.f32 %v2069_v21, %v1114_v36  ;;  %v1084_v38 = vmax.f32 %v1052_v45, %v2230_v63 }
 0x17f   : > { %1214 = vst [vmem:[%s2079_s4 + $0xc0] sm:$0xff] %v1182_v47  ;;  %v1152_v22 = vadd.f32 %v2069_v21, %v1113_v19  ;;  %v1561_v0 = vpop.f32.mrb[62].mxu0  ;;  %v1083_v24 = vmax.f32 %v1051_v61, %v2231_v23  ;;  %v1657_v50 = vpop.f32.mrb[62].mxu1 }
 0x180   : > { %v1185_v37 = vmax.f32 %v1153_v48, 0.0  ;;  %v1116_v2 = vmax.f32 %v1084_v38, %v1654_v14  ;;  %v1054_v39 = vmax.f32 %v2232_v9, %v1561_v0  ;;  %v694_v49 = vpop.f32.mrb[63].mxu0  ;;  %v1014_v1 = vpop.f32.mrb[63].mxu1 }
 0x181   : > { %v1184_v31 = vmax.f32 %v1152_v22, 0.0  ;;  %v1115_v3 = vmax.f32 %v1083_v24, %v1004_v62  ;;  %v1053_v15 = vmax.f32 %v2233_v51, %v694_v49 }
 0x182   : > { %1217 = vst [vmem:[%s2079_s4 + $0xd8] sm:$0xff] %v1185_v37  ;;  %v1155_v4 = vadd.f32 %v2069_v21, %v1116_v2  ;;  %v1086_v52 = vmax.f32 %v1054_v39, %v2234_v40 }
 0x183   : > { %1216 = vst [vmem:[%s2079_s4 + $0xd0] sm:$0xff] %v1184_v31  ;;  %v1154_v20 = vadd.f32 %v2069_v21, %v1115_v3  ;;  %v1085_v6 = vmax.f32 %v1053_v15, %v2235_v32 }
 0x184   : > { %v1187_v26 = vmax.f32 %v1155_v4, 0.0  ;;  %v1118_v25 = vmax.f32 %v1086_v52, %v1657_v50 }
 0x185   : > { %v1186_v54 = vmax.f32 %v1154_v20, 0.0  ;;  %v1117_v5 = vmax.f32 %v1085_v6, %v1014_v1 }
 0x186   : > { %1219 = vst [vmem:[%s2079_s4 + $0xe8] sm:$0xff] %v1187_v26  ;;  %v1157_v42 = vadd.f32 %v2069_v21, %v1118_v25 }
 0x187   : > { %1218 = vst [vmem:[%s2079_s4 + $0xe0] sm:$0xff] %v1186_v54  ;;  %v1156_v11 = vadd.f32 %v2069_v21, %v1117_v5 }
 0x188   : > { %v1189_v7 = vmax.f32 %v1157_v42, 0.0 }
 0x189   : > { %v1188_v16 = vmax.f32 %v1156_v11, 0.0 }
 0x18a   : > { %1221 = vst [vmem:[%s2079_s4 + $0xf8] sm:$0xff] %v1189_v7 }
 0x18b   : > { %1220 = vst [vmem:[%s2079_s4 + $0xf0] sm:$0xff] %v1188_v16 }
 0x18c PF: > { %s13_s12 = sadd.s32 1, %s1720_s12  }
 0x18d   : > { %p10_p5 = scmp.ge.s32.totalorder %s13_s12, 4  }
 0x18f   :  { %12 = sbr.rel (!%p10_p5) target bundleno = 1 (0x1), region = 62 }

// kernel: net_forward.4
= control target key start
LH: loop header
LB: loop body
LE: loop exit
PB: predicated region body
PF: predicated region fallthrough
CT: control target
= control target key end

     0   :  { %v442_v0 = vmov 0.0|0.0   ;;  %s804_s1 = inlined_call_operand.vmem [shape: f32[256,128], index: 1, kind: input, shape index: {}]   ;;  %s805_s0 = inlined_call_operand.vmem [shape: f32[224,256], index: 0, kind: input, shape index: {}]   ;;  %s806_s2 = inlined_call_operand.vmem [shape: f32[1,128], index: 2, kind: input, shape index: {}]   ;;  %s807_s3 = inlined_call_operand.vmem [shape: f32[56,128], index: 3, kind: output, shape index: {}]  }
   0x1   :  { %361 = vmatprep.subr.bf16.mxu0 %v442_v0  ;;  %v70_v1 = vld [vmem:[%s804_s1] sm:$0xff]  ;;  %v71_v2 = vld [vmem:[%s804_s1 + $0x8] sm:$0xff]  ;;  %409 = vmatprep.subr.bf16.mxu1 %v442_v0  ;;  %v72_v3 = vld [vmem:[%s804_s1 + $0x10] sm:$0xff] }
   0x2   :  { %v362_v4 = vpack.c.bf16 %v71_v2, %v70_v1  ;;  %v73_v5 = vld [vmem:[%s804_s1 + $0x18] sm:$0xff]  ;;  %v74_v7 = vld [vmem:[%s804_s1 + $0x20] sm:$0xff]  ;;  %v75_v8 = vld [vmem:[%s804_s1 + $0x28] sm:$0xff] }
   0x3   :  { %v365_v6 = vpack.c.bf16 %v73_v5, %v72_v3  ;;  %v368_v9 = vpack.c.bf16 %v75_v8, %v74_v7  ;;  %v76_v10 = vld [vmem:[%s804_s1 + $0x30] sm:$0xff]  ;;  %v77_v11 = vld [vmem:[%s804_s1 + $0x38] sm:$0xff]  ;;  %v15_v12 = vld [vmem:[%s805_s0 + $0x8] sm:$0xff] }
   0x4   :  { %363 = vmatpush1.bf16.msra.mxu0 %v362_v4  ;;  %425 = vmatpush1.bf16.msra.mxu1 %v362_v4  ;;  %v371_v13 = vpack.c.bf16 %v77_v11, %v76_v10  ;;  %v43_v14 = vld [vmem:[%s805_s0 + $0xe8] sm:$0xff]  ;;  %v78_v15 = vld [vmem:[%s804_s1 + $0x40] sm:$0xff]  ;;  %v80_v18 = vld [vmem:[%s804_s1 + $0x50] sm:$0xff] }
   0x5   :  { %364 = vmatprep.subr.bf16.mxu0 %v442_v0  ;;  %410 = vmatprep.subr.bf16.mxu1 %v442_v0  ;;  %v79_v16 = vld [vmem:[%s804_s1 + $0x48] sm:$0xff]  ;;  %v81_v19 = vld [vmem:[%s804_s1 + $0x58] sm:$0xff]  ;;  %v82_v21 = vld [vmem:[%s804_s1 + $0x60] sm:$0xff] }
   0x6   :  { %166 = vmatprep.mubr.f32.mxu0 %v15_v12  ;;  %236 = vmatprep.mubr.f32.mxu1 %v43_v14  ;;  %v374_v17 = vpack.c.bf16 %v79_v16, %v78_v15  ;;  %v377_v20 = vpack.c.bf16 %v81_v19, %v80_v18  ;;  %v83_v22 = vld [vmem:[%s804_s1 + $0x68] sm:$0xff]  ;;  %v84_v24 = vld [vmem:[%s804_s1 + $0x70] sm:$0xff]  ;;  %v85_v25 = vld [vmem:[%s804_s1 + $0x78] sm:$0xff] }
   0x7   :  { %v380_v23 = vpack.c.bf16 %v83_v22, %v82_v21  ;;  %v383_v26 = vpack.c.bf16 %v85_v25, %v84_v24  ;;  %v86_v27 = vld [vmem:[%s804_s1 + $0x80] sm:$0xff]  ;;  %v87_v28 = vld [vmem:[%s804_s1 + $0x88] sm:$0xff]  ;;  %v88_v30 = vld [vmem:[%s804_s1 + $0x90] sm:$0xff] }
   0x8   :  { %366 = vmatpush1.bf16.msra.mxu0 %v365_v6  ;;  %426 = vmatpush1.bf16.msra.mxu1 %v365_v6  ;;  %v386_v29 = vpack.c.bf16 %v87_v28, %v86_v27  ;;  %v89_v31 = vld [vmem:[%s804_s1 + $0x98] sm:$0xff]  ;;  %v90_v33 = vld [vmem:[%s804_s1 + $0xa0] sm:$0xff]  ;;  %v91_v34 = vld [vmem:[%s804_s1 + $0xa8] sm:$0xff] }
   0x9   :  { %367 = vmatprep.subr.bf16.mxu0 %v442_v0  ;;  %411 = vmatprep.subr.bf16.mxu1 %v442_v0  ;;  %v389_v32 = vpack.c.bf16 %v89_v31, %v88_v30  ;;  %v392_v35 = vpack.c.bf16 %v91_v34, %v90_v33  ;;  %v92_v36 = vld [vmem:[%s804_s1 + $0xb0] sm:$0xff]  ;;  %v93_v37 = vld [vmem:[%s804_s1 + $0xb8] sm:$0xff]  ;;  %v94_v39 = vld [vmem:[%s804_s1 + $0xc0] sm:$0xff] }
   0xa   :  { %v395_v38 = vpack.c.bf16 %v93_v37, %v92_v36  ;;  %v95_v40 = vld [vmem:[%s804_s1 + $0xc8] sm:$0xff]  ;;  %v96_v42 = vld [vmem:[%s804_s1 + $0xd0] sm:$0xff]  ;;  %v97_v43 = vld [vmem:[%s804_s1 + $0xd8] sm:$0xff] }
   0xb   :  { %v398_v41 = vpack.c.bf16 %v95_v40, %v94_v39  ;;  %v401_v44 = vpack.c.bf16 %v97_v43, %v96_v42  ;;  %v98_v45 = vld [vmem:[%s804_s1 + $0xe0] sm:$0xff]  ;;  %v99_v46 = vld [vmem:[%s804_s1 + $0xe8] sm:$0xff]  ;;  %v100_v48 = vld [vmem:[%s804_s1 + $0xf0] sm:$0xff] }
   0xc   :  { %369 = vmatpush1.bf16.msra.mxu0 %v368_v9  ;;  %427 = vmatpush1.bf16.msra.mxu1 %v368_v9  ;;  %v404_v47 = vpack.c.bf16 %v99_v46, %v98_v45  ;;  %v101_v49 = vld [vmem:[%s804_s1 + $0xf8] sm:$0xff]  ;;  %v14_v51 = vld [vmem:[%s805_s0] sm:$0xff]  ;;  %v16_v55 = vld [vmem:[%s805_s0 + $0x10] sm:$0xff] }
   0xd   :  { %370 = vmatprep.subr.bf16.mxu0 %v442_v0  ;;  %412 = vmatprep.subr.bf16.mxu1 %v442_v0  ;;  %v407_v50 = vpack.c.bf16 %v101_v49, %v100_v48  ;;  %v42_v52 = vld [vmem:[%s805_s0 + $0xe0] sm:$0xff]  ;;  %v17_v53 = vld [vmem:[%s805_s0 + $0x18] sm:$0xff]  ;;  %v44_v56 = vld [vmem:[%s805_s0 + $0xf0] sm:$0xff] }
   0xe   :  { %v45_v54 = vld [vmem:[%s805_s0 + $0xf8] sm:$0xff]  ;;  %v19_v57 = vld [vmem:[%s805_s0 + $0x28] sm:$0xff]  ;;  %v18_v59 = vld [vmem:[%s805_s0 + $0x20] sm:$0xff] }
   0xf   :  { %v47_v58 = vld [vmem:[%s805_s0 + $0x108] sm:$0xff]  ;;  %v46_v60 = vld [vmem:[%s805_s0 + $0x100] sm:$0xff]  ;;  %v21_v61 = vld [vmem:[%s805_s0 + $0x38] sm:$0xff] }
  0x10   :  { %372 = vmatpush1.bf16.msra.mxu0 %v371_v13  ;;  %428 = vmatpush1.bf16.msra.mxu1 %v371_v13  ;;  %v49_v62 = vld [vmem:[%s805_s0 + $0x118] sm:$0xff]  ;;  %v20_v63 = vld [vmem:[%s805_s0 + $0x30] sm:$0xff]  ;;  %v23_v1 = vld [vmem:[%s805_s0 + $0x48] sm:$0xff] }
  0x11   :  { %373 = vmatprep.subr.bf16.mxu0 %v442_v0  ;;  %413 = vmatprep.subr.bf16.mxu1 %v442_v0  ;;  %v51_v2 = vld [vmem:[%s805_s0 + $0x128] sm:$0xff]  ;;  %v22_v3 = vld [vmem:[%s805_s0 + $0x40] sm:$0xff]  ;;  %v25_v5 = vld [vmem:[%s805_s0 + $0x58] sm:$0xff] }
  0x12   :  { %v50_v4 = vld [vmem:[%s805_s0 + $0x120] sm:$0xff]  ;;  %v53_v6 = vld [vmem:[%s805_s0 + $0x138] sm:$0xff]  ;;  %v24_v7 = vld [vmem:[%s805_s0 + $0x50] sm:$0xff] }
  0x13   :  { %v52_v8 = vld [vmem:[%s805_s0 + $0x130] sm:$0xff]  ;;  %v27_v9 = vld [vmem:[%s805_s0 + $0x68] sm:$0xff]  ;;  %v26_v11 = vld [vmem:[%s805_s0 + $0x60] sm:$0xff] }
  0x14   :  { %375 = vmatpush1.bf16.msra.mxu0 %v374_v17  ;;  %429 = vmatpush1.bf16.msra.mxu1 %v374_v17  ;;  %v55_v10 = vld [vmem:[%s805_s0 + $0x148] sm:$0xff]  ;;  %v54_v12 = vld [vmem:[%s805_s0 + $0x140] sm:$0xff]  ;;  %v29_v13 = vld [vmem:[%s805_s0 + $0x78] sm:$0xff] }
  0x15   :  { %376 = vmatprep.subr.bf16.mxu0 %v442_v0  ;;  %414 = vmatprep.subr.bf16.mxu1 %v442_v0  ;;  %v57_v14 = vld [vmem:[%s805_s0 + $0x158] sm:$0xff]  ;;  %v28_v15 = vld [vmem:[%s805_s0 + $0x70] sm:$0xff]  ;;  %v31_v17 = vld [vmem:[%s805_s0 + $0x88] sm:$0xff] }
  0x16   :  { %v56_v16 = vld [vmem:[%s805_s0 + $0x150] sm:$0xff]  ;;  %v59_v18 = vld [vmem:[%s805_s0 + $0x168] sm:$0xff]  ;;  %v30_v19 = vld [vmem:[%s805_s0 + $0x80] sm:$0xff] }
  0x17   :  { %v33_v21 = vld [vmem:[%s805_s0 + $0x98] sm:$0xff]  ;;  %v60_v24 = vld [vmem:[%s805_s0 + $0x170] sm:$0xff]  ;;  %v35_v25 = vld [vmem:[%s805_s0 + $0xa8] sm:$0xff] }
  0x18   :  { %378 = vmatpush1.bf16.msra.mxu0 %v377_v20  ;;  %430 = vmatpush1.bf16.msra.mxu1 %v377_v20  ;;  %v58_v20 = vld [vmem:[%s805_s0 + $0x160] sm:$0xff]  ;;  %v61_v22 = vld [vmem:[%s805_s0 + $0x178] sm:$0xff]  ;;  %v36_v31 = vld [vmem:[%s805_s0 + $0xb0] sm:$0xff] }
  0x19   :  { %379 = vmatprep.subr.bf16.mxu0 %v442_v0  ;;  %415 = vmatprep.subr.bf16.mxu1 %v442_v0  ;;  %v34_v27 = vld [vmem:[%s805_s0 + $0xa0] sm:$0xff]  ;;  %v65_v30 = vld [vmem:[%s805_s0 + $0x198] sm:$0xff]  ;;  %v39_v33 = vld [vmem:[%s805_s0 + $0xc8] sm:$0xff] }
  0x1a   :  { %v62_v28 = vld [vmem:[%s805_s0 + $0x180] sm:$0xff]  ;;  %v67_v34 = vld [vmem:[%s805_s0 + $0x1a8] sm:$0xff]  ;;  %v41_v37 = vld [vmem:[%s805_s0 + $0xd8] sm:$0xff] }
  0x1b   :  { %v66_v36 = vld [vmem:[%s805_s0 + $0x1a0] sm:$0xff]  ;;  %v40_v39 = vld [vmem:[%s805_s0 + $0xd0] sm:$0xff] }
  0x1c   :  { %381 = vmatpush1.bf16.msra.mxu0 %v380_v23  ;;  %431 = vmatpush1.bf16.msra.mxu1 %v380_v23  ;;  %v32_v23 = vld [vmem:[%s805_s0 + $0x90] sm:$0xff] }
  0x1d   :  { %382 = vmatprep.subr.bf16.mxu0 %v442_v0  ;;  %416 = vmatprep.subr.bf16.mxu1 %v442_v0  ;;  %v68_v40 = vld [vmem:[%s805_s0 + $0x1b0] sm:$0xff] }
  0x20   :  { %384 = vmatpush1.bf16.msra.mxu0 %v383_v26  ;;  %432 = vmatpush1.bf16.msra.mxu1 %v383_v26  ;;  %v63_v26 = vld [vmem:[%s805_s0 + $0x188] sm:$0xff] }
  0x21   :  { %385 = vmatprep.subr.bf16.mxu0 %v442_v0  ;;  %417 = vmatprep.subr.bf16.mxu1 %v442_v0 }
  0x24   :  { %387 = vmatpush1.bf16.msra.mxu0 %v386_v29  ;;  %433 = vmatpush1.bf16.msra.mxu1 %v386_v29  ;;  %v37_v29 = vld [vmem:[%s805_s0 + $0xb8] sm:$0xff] }
  0x25   :  { %388 = vmatprep.subr.bf16.mxu0 %v442_v0  ;;  %418 = vmatprep.subr.bf16.mxu1 %v442_v0 }
  0x28   :  { %390 = vmatpush1.bf16.msra.mxu0 %v389_v32  ;;  %434 = vmatpush1.bf16.msra.mxu1 %v389_v32  ;;  %v64_v32 = vld [vmem:[%s805_s0 + $0x190] sm:$0xff] }
  0x29   :  { %391 = vmatprep.subr.bf16.mxu0 %v442_v0  ;;  %419 = vmatprep.subr.bf16.mxu1 %v442_v0 }
  0x2c   :  { %393 = vmatpush1.bf16.msra.mxu0 %v392_v35  ;;  %435 = vmatpush1.bf16.msra.mxu1 %v392_v35  ;;  %v38_v35 = vld [vmem:[%s805_s0 + $0xc0] sm:$0xff] }
  0x2d   :  { %394 = vmatprep.subr.bf16.mxu0 %v442_v0  ;;  %420 = vmatprep.subr.bf16.mxu1 %v442_v0 }
  0x30   :  { %396 = vmatpush1.bf16.msra.mxu0 %v395_v38  ;;  %436 = vmatpush1.bf16.msra.mxu1 %v395_v38  ;;  %v69_v38 = vld [vmem:[%s805_s0 + $0x1b8] sm:$0xff] }
  0x31   :  { %397 = vmatprep.subr.bf16.mxu0 %v442_v0  ;;  %421 = vmatprep.subr.bf16.mxu1 %v442_v0 }
  0x34   :  { %399 = vmatpush1.bf16.msra.mxu0 %v398_v41  ;;  %437 = vmatpush1.bf16.msra.mxu1 %v398_v41 }
  0x35   :  { %400 = vmatprep.subr.bf16.mxu0 %v442_v0  ;;  %422 = vmatprep.subr.bf16.mxu1 %v442_v0 }
  0x38   :  { %402 = vmatpush1.bf16.msra.mxu0 %v401_v44  ;;  %438 = vmatpush1.bf16.msra.mxu1 %v401_v44 }
  0x39   :  { %403 = vmatprep.subr.bf16.mxu0 %v442_v0  ;;  %423 = vmatprep.subr.bf16.mxu1 %v442_v0 }
  0x3c   :  { %405 = vmatpush1.bf16.msra.mxu0 %v404_v47  ;;  %439 = vmatpush1.bf16.msra.mxu1 %v404_v47 }
  0x3d   :  { %406 = vmatprep.subr.bf16.mxu0 %v442_v0  ;;  %424 = vmatprep.subr.bf16.mxu1 %v442_v0  ;;  %v48_v0 = vld [vmem:[%s805_s0 + $0x110] sm:$0xff] }
  0x40   :  { %408 = vmatpush1.bf16.msra.mxu0 %v407_v50  ;;  %440 = vmatpush1.bf16.msra.mxu1 %v407_v50 }
  0x43   :  { %167 = vmatmul.mubr.f32.vlgmr.msra.gmra.mrb[0].mxu0 %v14_v51  ;;  %237 = vmatmul.mubr.f32.vlgmr.msra.gmra.mrb[0].mxu1 %v42_v52 }
  0x44   :  { %171 = vmatprep.mubr.f32.mxu0 %v17_v53  ;;  %241 = vmatprep.mubr.f32.mxu1 %v45_v54 }
  0x47   :  { %172 = vmatmul.mubr.f32.gmra.mrb[2].mxu0 %v16_v55  ;;  %242 = vmatmul.mubr.f32.gmra.mrb[2].mxu1 %v44_v56 }
  0x48   :  { %176 = vmatprep.mubr.f32.mxu0 %v19_v57  ;;  %246 = vmatprep.mubr.f32.mxu1 %v47_v58 }
  0x4b   :  { %177 = vmatmul.mubr.f32.gmra.mrb[4].mxu0 %v18_v59  ;;  %247 = vmatmul.mubr.f32.gmra.mrb[4].mxu1 %v46_v60 }
  0x4c   :  { %181 = vmatprep.mubr.f32.mxu0 %v21_v61  ;;  %251 = vmatprep.mubr.f32.mxu1 %v49_v62 }
  0x4f   :  { %182 = vmatmul.mubr.f32.gmra.mrb[6].mxu0 %v20_v63  ;;  %252 = vmatmul.mubr.f32.gmra.mrb[6].mxu1 %v48_v0 }
  0x50   :  { %186 = vmatprep.mubr.f32.mxu0 %v23_v1  ;;  %256 = vmatprep.mubr.f32.mxu1 %v51_v2 }
  0x53   :  { %187 = vmatmul.mubr.f32.gmra.mrb[8].mxu0 %v22_v3  ;;  %257 = vmatmul.mubr.f32.gmra.mrb[8].mxu1 %v50_v4 }
  0x54   :  { %191 = vmatprep.mubr.f32.mxu0 %v25_v5  ;;  %261 = vmatprep.mubr.f32.mxu1 %v53_v6 }
  0x57   :  { %192 = vmatmul.mubr.f32.gmra.mrb[10].mxu0 %v24_v7  ;;  %262 = vmatmul.mubr.f32.gmra.mrb[10].mxu1 %v52_v8 }
  0x58   :  { %196 = vmatprep.mubr.f32.mxu0 %v27_v9  ;;  %266 = vmatprep.mubr.f32.mxu1 %v55_v10 }
  0x5b   :  { %197 = vmatmul.mubr.f32.gmra.mrb[12].mxu0 %v26_v11  ;;  %267 = vmatmul.mubr.f32.gmra.mrb[12].mxu1 %v54_v12  ;;  %v770_v11 = vld [vmem:[%s806_s2] ss:$0 sm:$0xff] }
  0x5c   :  { %201 = vmatprep.mubr.f32.mxu0 %v29_v13  ;;  %271 = vmatprep.mubr.f32.mxu1 %v57_v14 }
  0x5f   :  { %202 = vmatmul.mubr.f32.gmra.mrb[14].mxu0 %v28_v15  ;;  %272 = vmatmul.mubr.f32.gmra.mrb[14].mxu1 %v56_v16 }
  0x60   :  { %206 = vmatprep.mubr.f32.mxu0 %v31_v17  ;;  %276 = vmatprep.mubr.f32.mxu1 %v59_v18 }
  0x63   :  { %207 = vmatmul.mubr.f32.gmra.mrb[16].mxu0 %v30_v19  ;;  %277 = vmatmul.mubr.f32.gmra.mrb[16].mxu1 %v58_v20 }
  0x64   :  { %211 = vmatprep.mubr.f32.mxu0 %v33_v21  ;;  %281 = vmatprep.mubr.f32.mxu1 %v61_v22 }
  0x67   :  { %212 = vmatmul.mubr.f32.gmra.mrb[18].mxu0 %v32_v23  ;;  %282 = vmatmul.mubr.f32.gmra.mrb[18].mxu1 %v60_v24 }
  0x68   :  { %216 = vmatprep.mubr.f32.mxu0 %v35_v25  ;;  %286 = vmatprep.mubr.f32.mxu1 %v63_v26 }
  0x6b   :  { %217 = vmatmul.mubr.f32.gmra.mrb[20].mxu0 %v34_v27  ;;  %287 = vmatmul.mubr.f32.gmra.mrb[20].mxu1 %v62_v28 }
  0x6c   :  { %221 = vmatprep.mubr.f32.mxu0 %v37_v29  ;;  %291 = vmatprep.mubr.f32.mxu1 %v65_v30 }
  0x6f   :  { %222 = vmatmul.mubr.f32.gmra.mrb[22].mxu0 %v36_v31  ;;  %292 = vmatmul.mubr.f32.gmra.mrb[22].mxu1 %v64_v32 }
  0x70   :  { %226 = vmatprep.mubr.f32.mxu0 %v39_v33  ;;  %296 = vmatprep.mubr.f32.mxu1 %v67_v34 }
  0x73   :  { %227 = vmatmul.mubr.f32.gmra.mrb[24].mxu0 %v38_v35  ;;  %297 = vmatmul.mubr.f32.gmra.mrb[24].mxu1 %v66_v36 }
  0x74   :  { %231 = vmatprep.mubr.f32.mxu0 %v41_v37  ;;  %301 = vmatprep.mubr.f32.mxu1 %v69_v38 }
  0x77   :  { %232 = vmatmul.mubr.f32.gmra.mrb[26].mxu0 %v40_v39  ;;  %302 = vmatmul.mubr.f32.gmra.mrb[26].mxu1 %v68_v40 }
 0x116   :  { %v168_v41 = vpop.f32.mrb[0].mxu0  ;;  %v238_v42 = vpop.f32.mrb[0].mxu1 }
 0x117   :  { %v170_v43 = vpop.f32.mrb[1].mxu0  ;;  %v240_v44 = vpop.f32.mrb[1].mxu1 }
 0x11a   :  { %v173_v45 = vpop.f32.mrb[2].mxu0  ;;  %v243_v46 = vpop.f32.mrb[2].mxu1 }
 0x11b   :  { %v175_v47 = vpop.f32.mrb[3].mxu0  ;;  %v245_v48 = vpop.f32.mrb[3].mxu1 }
 0x11e   :  { %v178_v49 = vpop.f32.mrb[4].mxu0  ;;  %v248_v50 = vpop.f32.mrb[4].mxu1 }
 0x11f   :  { %v180_v51 = vpop.f32.mrb[5].mxu0  ;;  %v250_v52 = vpop.f32.mrb[5].mxu1 }
 0x122   :  { %v183_v53 = vpop.f32.mrb[6].mxu0  ;;  %v253_v54 = vpop.f32.mrb[6].mxu1 }
 0x123   :  { %v185_v55 = vpop.f32.mrb[7].mxu0  ;;  %v255_v56 = vpop.f32.mrb[7].mxu1 }
 0x126   :  { %v188_v57 = vpop.f32.mrb[8].mxu0  ;;  %v258_v58 = vpop.f32.mrb[8].mxu1 }
 0x127   :  { %v190_v59 = vpop.f32.mrb[9].mxu0  ;;  %v260_v60 = vpop.f32.mrb[9].mxu1 }
 0x12a   :  { %v759_v61 = vpop.f32.mrb[10].mxu0  ;;  %v761_v62 = vpop.f32.mrb[10].mxu1 }
 0x12b   :  { %v195_v63 = vpop.f32.mrb[11].mxu0  ;;  %v265_v0 = vpop.f32.mrb[11].mxu1 }
 0x12e   :  { %v763_v1 = vpop.f32.mrb[12].mxu0  ;;  %v765_v2 = vpop.f32.mrb[12].mxu1 }
 0x12f   :  { %v200_v3 = vpop.f32.mrb[13].mxu0  ;;  %v270_v4 = vpop.f32.mrb[13].mxu1 }
 0x132   :  { %v203_v5 = vpop.f32.mrb[14].mxu0  ;;  %v273_v6 = vpop.f32.mrb[14].mxu1 }
 0x133   :  { %v307_v7 = vmax.f32 %v168_v41, %v203_v5  ;;  %v205_v8 = vpop.f32.mrb[15].mxu0  ;;  %v275_v9 = vpop.f32.mrb[15].mxu1 }
 0x135   :  { %v314_v10 = vmax.f32 %v307_v7, %v238_v42 }
 0x136   :  { %v208_v12 = vpop.f32.mrb[16].mxu0  ;;  %v278_v13 = vpop.f32.mrb[16].mxu1 }
 0x137   :  { %v321_v14 = vmax.f32 %v314_v10, %v273_v6  ;;  %v308_v15 = vmax.f32 %v173_v45, %v208_v12  ;;  %v210_v16 = vpop.f32.mrb[17].mxu0  ;;  %v280_v17 = vpop.f32.mrb[17].mxu1 }
 0x139   :  { %v335_v18 = vadd.f32 %v770_v11, %v321_v14  ;;  %v315_v19 = vmax.f32 %v308_v15, %v243_v46 }
 0x13a   :  { %v213_v20 = vpop.f32.mrb[18].mxu0  ;;  %v283_v21 = vpop.f32.mrb[18].mxu1 }
 0x13b   :  { %v342_v22 = vmax.f32 %v335_v18, 0.0  ;;  %v322_v23 = vmax.f32 %v315_v19, %v278_v13  ;;  %v309_v24 = vmax.f32 %v178_v49, %v213_v20  ;;  %v215_v25 = vpop.f32.mrb[19].mxu0  ;;  %v285_v26 = vpop.f32.mrb[19].mxu1 }
 0x13d   :  { %349 = vst [vmem:[%s807_s3] sm:$0xff] %v342_v22  ;;  %v336_v27 = vadd.f32 %v770_v11, %v322_v23  ;;  %v316_v28 = vmax.f32 %v309_v24, %v248_v50 }
 0x13e   :  { %v218_v29 = vpop.f32.mrb[20].mxu0  ;;  %v288_v30 = vpop.f32.mrb[20].mxu1 }
 0x13f   :  { %v343_v31 = vmax.f32 %v336_v27, 0.0  ;;  %v323_v32 = vmax.f32 %v316_v28, %v283_v21  ;;  %v310_v33 = vmax.f32 %v183_v53, %v218_v29  ;;  %v220_v34 = vpop.f32.mrb[21].mxu0  ;;  %v290_v35 = vpop.f32.mrb[21].mxu1 }
 0x141   :  { %350 = vst [vmem:[%s807_s3 + $0x8] sm:$0xff] %v343_v31  ;;  %v337_v36 = vadd.f32 %v770_v11, %v323_v32  ;;  %v317_v37 = vmax.f32 %v310_v33, %v253_v54 }
 0x142   :  { %v223_v38 = vpop.f32.mrb[22].mxu0  ;;  %v293_v39 = vpop.f32.mrb[22].mxu1 }
 0x143   :  { %v344_v40 = vmax.f32 %v337_v36, 0.0  ;;  %v324_v41 = vmax.f32 %v317_v37, %v288_v30  ;;  %v311_v42 = vmax.f32 %v188_v57, %v223_v38  ;;  %v225_v43 = vpop.f32.mrb[23].mxu0  ;;  %v295_v44 = vpop.f32.mrb[23].mxu1 }
 0x145   :  { %351 = vst [vmem:[%s807_s3 + $0x10] sm:$0xff] %v344_v40  ;;  %v338_v45 = vadd.f32 %v770_v11, %v324_v41  ;;  %v318_v46 = vmax.f32 %v311_v42, %v258_v58 }
 0x146   :  { %v228_v47 = vpop.f32.mrb[24].mxu0  ;;  %v298_v48 = vpop.f32.mrb[24].mxu1 }
 0x147   :  { %v345_v49 = vmax.f32 %v338_v45, 0.0  ;;  %v325_v50 = vmax.f32 %v318_v46, %v293_v39  ;;  %v312_v51 = vmax.f32 %v759_v61, %v228_v47  ;;  %v230_v52 = vpop.f32.mrb[25].mxu0  ;;  %v300_v53 = vpop.f32.mrb[25].mxu1 }
 0x149   :  { %352 = vst [vmem:[%s807_s3 + $0x18] sm:$0xff] %v345_v49  ;;  %v339_v54 = vadd.f32 %v770_v11, %v325_v50  ;;  %v319_v55 = vmax.f32 %v312_v51, %v761_v62 }
 0x14a   :  { %v233_v56 = vpop.f32.mrb[26].mxu0  ;;  %v303_v57 = vpop.f32.mrb[26].mxu1 }
 0x14b   :  { %v346_v59 = vmax.f32 %v339_v54, 0.0  ;;  %v326_v58 = vmax.f32 %v319_v55, %v298_v48  ;;  %v313_v60 = vmax.f32 %v763_v1, %v233_v56  ;;  %v235_v63 = vpop.f32.mrb[27].mxu0  ;;  %v305_v0 = vpop.f32.mrb[27].mxu1 }
 0x14d   :  { %353 = vst [vmem:[%s807_s3 + $0x20] sm:$0xff] %v346_v59  ;;  %v340_v61 = vadd.f32 %v770_v11, %v326_v58  ;;  %v320_v3 = vmax.f32 %v313_v60, %v765_v2 }
 0x14f   :  { %v347_v4 = vmax.f32 %v340_v61, 0.0  ;;  %v327_v5 = vmax.f32 %v320_v3, %v303_v57 }
 0x151   :  { %354 = vst [vmem:[%s807_s3 + $0x28] sm:$0xff] %v347_v4  ;;  %v341_v62 = vadd.f32 %v770_v11, %v327_v5 }
 0x153   :  { %v348_v6 = vmax.f32 %v341_v62, 0.0 }
 0x155   :  { %355 = vst [vmem:[%s807_s3 + $0x30] sm:$0xff] %v348_v6 }

// kernel: net_forward.5
= control target key start
LH: loop header
LB: loop body
LE: loop exit
PB: predicated region body
PF: predicated region fallthrough
CT: control target
= control target key end

     0   :  { %s863_s1 = inlined_call_operand.vmem [shape: f32[512,256], index: 1, kind: input, shape index: {}]   ;;  %s864_s0 = inlined_call_operand.vmem [shape: f32[8,512], index: 0, kind: input, shape index: {}]   ;;  %s865_s2 = inlined_call_operand.vmem [shape: f32[1,256], index: 2, kind: input, shape index: {}]   ;;  %s866_s3 = inlined_call_operand.vmem [shape: f32[8,256], index: 3, kind: output, shape index: {}]  }
   0x1   :  { %v19_v0 = vld [vmem:[%s863_s1 + $0x8] sm:$0xff]  ;;  %v21_v1 = vld [vmem:[%s863_s1 + $0x18] sm:$0xff]  ;;  %v18_v2 = vld [vmem:[%s863_s1] sm:$0xff] }
   0x2   :  { %v306_v3 = vpack.c.bf16 %v21_v1, %v19_v0  ;;  %v20_v4 = vld [vmem:[%s863_s1 + $0x10] sm:$0xff]  ;;  %v83_v5 = vld [vmem:[%s863_s1 + $0x208] sm:$0xff]  ;;  %v85_v6 = vld [vmem:[%s863_s1 + $0x218] sm:$0xff] }
   0x3   :  { %v308_v7 = vpack.c.bf16 %v20_v4, %v18_v2  ;;  %v370_v8 = vpack.c.bf16 %v85_v6, %v83_v5  ;;  %v82_v9 = vld [vmem:[%s863_s1 + $0x200] sm:$0xff]  ;;  %v84_v10 = vld [vmem:[%s863_s1 + $0x210] sm:$0xff]  ;;  %v23_v11 = vld [vmem:[%s863_s1 + $0x28] sm:$0xff] }
   0x4   :  { %307 = vmatprep.subr.bf16.mxu1 %v306_v3  ;;  %v372_v12 = vpack.c.bf16 %v84_v10, %v82_v9  ;;  %v25_v13 = vld [vmem:[%s863_s1 + $0x38] sm:$0xff]  ;;  %v22_v14 = vld [vmem:[%s863_s1 + $0x20] sm:$0xff]  ;;  %v24_v15 = vld [vmem:[%s863_s1 + $0x30] sm:$0xff] }
   0x5   :  { %309 = vmatpush1.bf16.msra.mxu1 %v308_v7  ;;  %371 = vmatprep.subr.bf16.mxu0 %v370_v8  ;;  %v310_v16 = vpack.c.bf16 %v25_v13, %v23_v11  ;;  %v312_v17 = vpack.c.bf16 %v24_v15, %v22_v14  ;;  %v87_v18 = vld [vmem:[%s863_s1 + $0x228] sm:$0xff]  ;;  %v89_v19 = vld [vmem:[%s863_s1 + $0x238] sm:$0xff]  ;;  %v86_v20 = vld [vmem:[%s863_s1 + $0x220] sm:$0xff] }
   0x6   :  { %373 = vmatpush1.bf16.msra.mxu0 %v372_v12  ;;  %v374_v21 = vpack.c.bf16 %v89_v19, %v87_v18  ;;  %v88_v22 = vld [vmem:[%s863_s1 + $0x230] sm:$0xff]  ;;  %v27_v23 = vld [vmem:[%s863_s1 + $0x48] sm:$0xff]  ;;  %v29_v24 = vld [vmem:[%s863_s1 + $0x58] sm:$0xff] }
   0x7   :  { %311 = vmatprep.subr.bf16.mxu1 %v310_v16  ;;  %v376_v25 = vpack.c.bf16 %v88_v22, %v86_v20  ;;  %v314_v26 = vpack.c.bf16 %v29_v24, %v27_v23  ;;  %v26_v27 = vld [vmem:[%s863_s1 + $0x40] sm:$0xff]  ;;  %v28_v28 = vld [vmem:[%s863_s1 + $0x50] sm:$0xff]  ;;  %v91_v29 = vld [vmem:[%s863_s1 + $0x248] sm:$0xff] }
   0x8   :  { %375 = vmatprep.subr.bf16.mxu0 %v374_v21  ;;  %v93_v30 = vld [vmem:[%s863_s1 + $0x258] sm:$0xff]  ;;  %v90_v31 = vld [vmem:[%s863_s1 + $0x240] sm:$0xff]  ;;  %v92_v32 = vld [vmem:[%s863_s1 + $0x250] sm:$0xff]  ;;  %v316_v33 = vpack.c.bf16 %v28_v28, %v26_v27 }
   0x9   :  { %313 = vmatpush1.bf16.msra.mxu1 %v312_v17  ;;  %v378_v34 = vpack.c.bf16 %v93_v30, %v91_v29  ;;  %v31_v35 = vld [vmem:[%s863_s1 + $0x68] sm:$0xff]  ;;  %v33_v36 = vld [vmem:[%s863_s1 + $0x78] sm:$0xff]  ;;  %v30_v37 = vld [vmem:[%s863_s1 + $0x60] sm:$0xff]  ;;  %v380_v38 = vpack.c.bf16 %v92_v32, %v90_v31 }
   0xa   :  { %377 = vmatpush1.bf16.msra.mxu0 %v376_v25  ;;  %315 = vmatprep.subr.bf16.mxu1 %v314_v26  ;;  %v318_v39 = vpack.c.bf16 %v33_v36, %v31_v35  ;;  %v32_v40 = vld [vmem:[%s863_s1 + $0x70] sm:$0xff]  ;;  %v95_v41 = vld [vmem:[%s863_s1 + $0x268] sm:$0xff]  ;;  %v97_v42 = vld [vmem:[%s863_s1 + $0x278] sm:$0xff] }
   0xb   :  { %379 = vmatprep.subr.bf16.mxu0 %v378_v34  ;;  %v382_v43 = vpack.c.bf16 %v97_v42, %v95_v41  ;;  %v94_v44 = vld [vmem:[%s863_s1 + $0x260] sm:$0xff]  ;;  %v96_v45 = vld [vmem:[%s863_s1 + $0x270] sm:$0xff]  ;;  %v35_v46 = vld [vmem:[%s863_s1 + $0x88] sm:$0xff]  ;;  %v320_v48 = vpack.c.bf16 %v32_v40, %v30_v37 }
   0xc   :  { %v37_v47 = vld [vmem:[%s863_s1 + $0x98] sm:$0xff]  ;;  %v99_v49 = vld [vmem:[%s863_s1 + $0x288] sm:$0xff]  ;;  %v384_v51 = vpack.c.bf16 %v96_v45, %v94_v44  ;;  %v34_v53 = vld [vmem:[%s863_s1 + $0x80] sm:$0xff] }
   0xd   :  { %317 = vmatpush1.bf16.msra.mxu1 %v316_v33  ;;  %v101_v50 = vld [vmem:[%s863_s1 + $0x298] sm:$0xff]  ;;  %v322_v52 = vpack.c.bf16 %v37_v47, %v35_v46  ;;  %v36_v54 = vld [vmem:[%s863_s1 + $0x90] sm:$0xff]  ;;  %v98_v55 = vld [vmem:[%s863_s1 + $0x280] sm:$0xff] }
   0xe   :  { %381 = vmatpush1.bf16.msra.mxu0 %v380_v38  ;;  %319 = vmatprep.subr.bf16.mxu1 %v318_v39  ;;  %v386_v56 = vpack.c.bf16 %v101_v50, %v99_v49  ;;  %v100_v57 = vld [vmem:[%s863_s1 + $0x290] sm:$0xff]  ;;  %v39_v58 = vld [vmem:[%s863_s1 + $0xa8] sm:$0xff]  ;;  %v41_v59 = vld [vmem:[%s863_s1 + $0xb8] sm:$0xff]  ;;  %v324_v62 = vpack.c.bf16 %v36_v54, %v34_v53 }
   0xf   :  { %383 = vmatprep.subr.bf16.mxu0 %v382_v43  ;;  %v103_v60 = vld [vmem:[%s863_s1 + $0x2a8] sm:$0xff]  ;;  %v105_v61 = vld [vmem:[%s863_s1 + $0x2b8] sm:$0xff]  ;;  %v388_v63 = vpack.c.bf16 %v100_v57, %v98_v55  ;;  %v326_v0 = vpack.c.bf16 %v41_v59, %v39_v58  ;;  %v38_v1 = vld [vmem:[%s863_s1 + $0xa0] sm:$0xff] }
  0x10   :  { %v40_v2 = vld [vmem:[%s863_s1 + $0xb0] sm:$0xff]  ;;  %v102_v3 = vld [vmem:[%s863_s1 + $0x2a0] sm:$0xff]  ;;  %v390_v4 = vpack.c.bf16 %v105_v61, %v103_v60  ;;  %v43_v6 = vld [vmem:[%s863_s1 + $0xc8] sm:$0xff] }
  0x11   :  { %321 = vmatpush1.bf16.msra.mxu1 %v320_v48  ;;  %v104_v5 = vld [vmem:[%s863_s1 + $0x2b0] sm:$0xff]  ;;  %v45_v7 = vld [vmem:[%s863_s1 + $0xd8] sm:$0xff]  ;;  %v107_v8 = vld [vmem:[%s863_s1 + $0x2c8] sm:$0xff]  ;;  %v328_v10 = vpack.c.bf16 %v40_v2, %v38_v1 }
  0x12   :  { %385 = vmatpush1.bf16.msra.mxu0 %v384_v51  ;;  %323 = vmatprep.subr.bf16.mxu1 %v322_v52  ;;  %v109_v9 = vld [vmem:[%s863_s1 + $0x2d8] sm:$0xff]  ;;  %v392_v11 = vpack.c.bf16 %v104_v5, %v102_v3  ;;  %v330_v12 = vpack.c.bf16 %v45_v7, %v43_v6  ;;  %v42_v13 = vld [vmem:[%s863_s1 + $0xc0] sm:$0xff]  ;;  %v44_v14 = vld [vmem:[%s863_s1 + $0xd0] sm:$0xff] }
  0x13   :  { %387 = vmatprep.subr.bf16.mxu0 %v386_v56  ;;  %v106_v15 = vld [vmem:[%s863_s1 + $0x2c0] sm:$0xff]  ;;  %v394_v16 = vpack.c.bf16 %v109_v9, %v107_v8  ;;  %v108_v17 = vld [vmem:[%s863_s1 + $0x2d0] sm:$0xff]  ;;  %v47_v18 = vld [vmem:[%s863_s1 + $0xe8] sm:$0xff]  ;;  %v332_v22 = vpack.c.bf16 %v44_v14, %v42_v13 }
  0x14   :  { %v49_v19 = vld [vmem:[%s863_s1 + $0xf8] sm:$0xff]  ;;  %v111_v20 = vld [vmem:[%s863_s1 + $0x2e8] sm:$0xff]  ;;  %v396_v23 = vpack.c.bf16 %v108_v17, %v106_v15  ;;  %v46_v25 = vld [vmem:[%s863_s1 + $0xe0] sm:$0xff] }
  0x15   :  { %325 = vmatpush1.bf16.msra.mxu1 %v324_v62  ;;  %v113_v21 = vld [vmem:[%s863_s1 + $0x2f8] sm:$0xff]  ;;  %v334_v24 = vpack.c.bf16 %v49_v19, %v47_v18  ;;  %v48_v26 = vld [vmem:[%s863_s1 + $0xf0] sm:$0xff]  ;;  %v110_v27 = vld [vmem:[%s863_s1 + $0x2e0] sm:$0xff] }
  0x16   :  { %389 = vmatpush1.bf16.msra.mxu0 %v388_v63  ;;  %327 = vmatprep.subr.bf16.mxu1 %v326_v0  ;;  %v398_v28 = vpack.c.bf16 %v113_v21, %v111_v20  ;;  %v112_v29 = vld [vmem:[%s863_s1 + $0x2f0] sm:$0xff]  ;;  %v51_v30 = vld [vmem:[%s863_s1 + $0x108] sm:$0xff]  ;;  %v53_v31 = vld [vmem:[%s863_s1 + $0x118] sm:$0xff]  ;;  %v336_v34 = vpack.c.bf16 %v48_v26, %v46_v25 }
  0x17   :  { %391 = vmatprep.subr.bf16.mxu0 %v390_v4  ;;  %v115_v32 = vld [vmem:[%s863_s1 + $0x308] sm:$0xff]  ;;  %v117_v33 = vld [vmem:[%s863_s1 + $0x318] sm:$0xff]  ;;  %v400_v35 = vpack.c.bf16 %v112_v29, %v110_v27  ;;  %v338_v36 = vpack.c.bf16 %v53_v31, %v51_v30  ;;  %v50_v37 = vld [vmem:[%s863_s1 + $0x100] sm:$0xff] }
  0x18   :  { %v52_v38 = vld [vmem:[%s863_s1 + $0x110] sm:$0xff]  ;;  %v114_v39 = vld [vmem:[%s863_s1 + $0x300] sm:$0xff]  ;;  %v402_v40 = vpack.c.bf16 %v117_v33, %v115_v32  ;;  %v55_v42 = vld [vmem:[%s863_s1 + $0x128] sm:$0xff] }
  0x19   :  { %329 = vmatpush1.bf16.msra.mxu1 %v328_v10  ;;  %v116_v41 = vld [vmem:[%s863_s1 + $0x310] sm:$0xff]  ;;  %v57_v43 = vld [vmem:[%s863_s1 + $0x138] sm:$0xff]  ;;  %v119_v44 = vld [vmem:[%s863_s1 + $0x328] sm:$0xff]  ;;  %v340_v46 = vpack.c.bf16 %v52_v38, %v50_v37 }
  0x1a   :  { %393 = vmatpush1.bf16.msra.mxu0 %v392_v11  ;;  %331 = vmatprep.subr.bf16.mxu1 %v330_v12  ;;  %v121_v45 = vld [vmem:[%s863_s1 + $0x338] sm:$0xff]  ;;  %v404_v47 = vpack.c.bf16 %v116_v41, %v114_v39  ;;  %v342_v48 = vpack.c.bf16 %v57_v43, %v55_v42  ;;  %v54_v49 = vld [vmem:[%s863_s1 + $0x120] sm:$0xff]  ;;  %v56_v50 = vld [vmem:[%s863_s1 + $0x130] sm:$0xff] }
  0x1b   :  { %395 = vmatprep.subr.bf16.mxu0 %v394_v16  ;;  %v118_v51 = vld [vmem:[%s863_s1 + $0x320] sm:$0xff]  ;;  %v406_v52 = vpack.c.bf16 %v121_v45, %v119_v44  ;;  %v120_v53 = vld [vmem:[%s863_s1 + $0x330] sm:$0xff]  ;;  %v59_v54 = vld [vmem:[%s863_s1 + $0x148] sm:$0xff]  ;;  %v344_v58 = vpack.c.bf16 %v56_v50, %v54_v49 }
  0x1c   :  { %v61_v55 = vld [vmem:[%s863_s1 + $0x158] sm:$0xff]  ;;  %v123_v56 = vld [vmem:[%s863_s1 + $0x348] sm:$0xff]  ;;  %v408_v59 = vpack.c.bf16 %v120_v53, %v118_v51  ;;  %v58_v61 = vld [vmem:[%s863_s1 + $0x140] sm:$0xff] }
  0x1d   :  { %333 = vmatpush1.bf16.msra.mxu1 %v332_v22  ;;  %v125_v57 = vld [vmem:[%s863_s1 + $0x358] sm:$0xff]  ;;  %v346_v60 = vpack.c.bf16 %v61_v55, %v59_v54  ;;  %v60_v62 = vld [vmem:[%s863_s1 + $0x150] sm:$0xff]  ;;  %v122_v63 = vld [vmem:[%s863_s1 + $0x340] sm:$0xff] }
  0x1e   :  { %397 = vmatpush1.bf16.msra.mxu0 %v396_v23  ;;  %335 = vmatprep.subr.bf16.mxu1 %v334_v24  ;;  %v410_v0 = vpack.c.bf16 %v125_v57, %v123_v56  ;;  %v124_v1 = vld [vmem:[%s863_s1 + $0x350] sm:$0xff]  ;;  %v63_v2 = vld [vmem:[%s863_s1 + $0x168] sm:$0xff]  ;;  %v65_v3 = vld [vmem:[%s863_s1 + $0x178] sm:$0xff]  ;;  %v348_v6 = vpack.c.bf16 %v60_v62, %v58_v61 }
  0x1f   :  { %399 = vmatprep.subr.bf16.mxu0 %v398_v28  ;;  %v127_v4 = vld [vmem:[%s863_s1 + $0x368] sm:$0xff]  ;;  %v129_v5 = vld [vmem:[%s863_s1 + $0x378] sm:$0xff]  ;;  %v62_v7 = vld [vmem:[%s863_s1 + $0x160] sm:$0xff]  ;;  %v412_v8 = vpack.c.bf16 %v124_v1, %v122_v63  ;;  %v350_v9 = vpack.c.bf16 %v65_v3, %v63_v2 }
  0x20   :  { %v64_v10 = vld [vmem:[%s863_s1 + $0x170] sm:$0xff]  ;;  %v126_v11 = vld [vmem:[%s863_s1 + $0x360] sm:$0xff]  ;;  %v414_v13 = vpack.c.bf16 %v129_v5, %v127_v4  ;;  %v67_v14 = vld [vmem:[%s863_s1 + $0x188] sm:$0xff]  ;;  %v148_v4 = vlaneseq }
  0x21   :  { %337 = vmatpush1.bf16.msra.mxu1 %v336_v34  ;;  %v128_v12 = vld [vmem:[%s863_s1 + $0x370] sm:$0xff]  ;;  %v69_v15 = vld [vmem:[%s863_s1 + $0x198] sm:$0xff]  ;;  %v15_v16 = vld [vmem:[%s864_s0 + $0x8] sm:$0xff]  ;;  %v352_v20 = vpack.c.bf16 %v64_v10, %v62_v7 }
  0x22   :  { %401 = vmatpush1.bf16.msra.mxu0 %v400_v35  ;;  %339 = vmatprep.subr.bf16.mxu1 %v338_v36  ;;  %v131_v17 = vld [vmem:[%s863_s1 + $0x388] sm:$0xff]  ;;  %v133_v18 = vld [vmem:[%s863_s1 + $0x398] sm:$0xff]  ;;  %v416_v21 = vpack.c.bf16 %v128_v12, %v126_v11  ;;  %v354_v22 = vpack.c.bf16 %v69_v15, %v67_v14  ;;  %v66_v23 = vld [vmem:[%s863_s1 + $0x180] sm:$0xff]  ;;  %v149_v5 = vshrl.u32 %v148_v4, 7 }
  0x23   :  { %403 = vmatprep.subr.bf16.mxu0 %v402_v40  ;;  %222 = vmatprep.mubr.f32.mxu1 %v15_v16  ;;  %v17_v19 = vld [vmem:[%s864_s0 + $0x18] sm:$0xff]  ;;  %v68_v24 = vld [vmem:[%s863_s1 + $0x190] sm:$0xff]  ;;  %v130_v25 = vld [vmem:[%s863_s1 + $0x380] sm:$0xff]  ;;  %v418_v26 = vpack.c.bf16 %v133_v18, %v131_v17 }
  0x24   :  { %293 = vmatprep.mubr.f32.mxu0 %v17_v19  ;;  %v132_v27 = vld [vmem:[%s863_s1 + $0x390] sm:$0xff]  ;;  %v71_v28 = vld [vmem:[%s863_s1 + $0x1a8] sm:$0xff]  ;;  %v73_v29 = vld [vmem:[%s863_s1 + $0x1b8] sm:$0xff]  ;;  %v356_v32 = vpack.c.bf16 %v68_v24, %v66_v23 }
  0x25   :  { %341 = vmatpush1.bf16.msra.mxu1 %v340_v46  ;;  %v135_v30 = vld [vmem:[%s863_s1 + $0x3a8] sm:$0xff]  ;;  %v137_v31 = vld [vmem:[%s863_s1 + $0x3b8] sm:$0xff]  ;;  %v420_v33 = vpack.c.bf16 %v132_v27, %v130_v25  ;;  %v358_v34 = vpack.c.bf16 %v73_v29, %v71_v28  ;;  %v70_v35 = vld [vmem:[%s863_s1 + $0x1a0] sm:$0xff] }
  0x26   :  { %405 = vmatpush1.bf16.msra.mxu0 %v404_v47  ;;  %343 = vmatprep.subr.bf16.mxu1 %v342_v48  ;;  %v72_v36 = vld [vmem:[%s863_s1 + $0x1b0] sm:$0xff]  ;;  %v134_v37 = vld [vmem:[%s863_s1 + $0x3a0] sm:$0xff]  ;;  %v422_v38 = vpack.c.bf16 %v137_v31, %v135_v30  ;;  %v75_v40 = vld [vmem:[%s863_s1 + $0x1c8] sm:$0xff] }
  0x27   :  { %407 = vmatprep.subr.bf16.mxu0 %v406_v52  ;;  %v136_v39 = vld [vmem:[%s863_s1 + $0x3b0] sm:$0xff]  ;;  %v77_v41 = vld [vmem:[%s863_s1 + $0x1d8] sm:$0xff]  ;;  %v139_v42 = vld [vmem:[%s863_s1 + $0x3c8] sm:$0xff]  ;;  %v360_v44 = vpack.c.bf16 %v72_v36, %v70_v35 }
  0x28   :  { %v141_v43 = vld [vmem:[%s863_s1 + $0x3d8] sm:$0xff]  ;;  %v424_v45 = vpack.c.bf16 %v136_v39, %v134_v37  ;;  %v362_v46 = vpack.c.bf16 %v77_v41, %v75_v40  ;;  %v74_v47 = vld [vmem:[%s863_s1 + $0x1c0] sm:$0xff]  ;;  %v76_v48 = vld [vmem:[%s863_s1 + $0x1d0] sm:$0xff] }
  0x29   :  { %345 = vmatpush1.bf16.msra.mxu1 %v344_v58  ;;  %v138_v49 = vld [vmem:[%s863_s1 + $0x3c0] sm:$0xff]  ;;  %v426_v50 = vpack.c.bf16 %v141_v43, %v139_v42  ;;  %v140_v51 = vld [vmem:[%s863_s1 + $0x3d0] sm:$0xff]  ;;  %v79_v52 = vld [vmem:[%s863_s1 + $0x1e8] sm:$0xff]  ;;  %v364_v56 = vpack.c.bf16 %v76_v48, %v74_v47 }
  0x2a   :  { %409 = vmatpush1.bf16.msra.mxu0 %v408_v59  ;;  %347 = vmatprep.subr.bf16.mxu1 %v346_v60  ;;  %v81_v53 = vld [vmem:[%s863_s1 + $0x1f8] sm:$0xff]  ;;  %v143_v54 = vld [vmem:[%s863_s1 + $0x3e8] sm:$0xff]  ;;  %v428_v57 = vpack.c.bf16 %v140_v51, %v138_v49  ;;  %v78_v59 = vld [vmem:[%s863_s1 + $0x1e0] sm:$0xff] }
  0x2b   :  { %411 = vmatprep.subr.bf16.mxu0 %v410_v0  ;;  %v145_v55 = vld [vmem:[%s863_s1 + $0x3f8] sm:$0xff]  ;;  %v366_v58 = vpack.c.bf16 %v81_v53, %v79_v52  ;;  %v80_v60 = vld [vmem:[%s863_s1 + $0x1f0] sm:$0xff]  ;;  %v142_v62 = vld [vmem:[%s863_s1 + $0x3e0] sm:$0xff] }
  0x2c   :  { %v430_v61 = vpack.c.bf16 %v145_v55, %v143_v54  ;;  %v144_v63 = vld [vmem:[%s863_s1 + $0x3f0] sm:$0xff]  ;;  %v368_v0 = vpack.c.bf16 %v80_v60, %v78_v59  ;;  %v14_v2 = vld [vmem:[%s864_s0] sm:$0xff] }
  0x2d   :  { %349 = vmatpush1.bf16.msra.mxu1 %v348_v6  ;;  %v432_v1 = vpack.c.bf16 %v144_v63, %v142_v62  ;;  %v16_v3 = vld [vmem:[%s864_s0 + $0x10] sm:$0xff]  ;;  %v150_v6 = vsub.s32 0, %v149_v5  ;;  %v146_v7 = vld [vmem:[%s865_s2] sm:$0x3] }
  0x2e   :  { %413 = vmatpush1.bf16.msra.mxu0 %v412_v8  ;;  %351 = vmatprep.subr.bf16.mxu1 %v350_v9  ;;  %v154_v8 = vsub.s32 1, %v149_v5 }
  0x2f   :  { %415 = vmatprep.subr.bf16.mxu0 %v414_v13  ;;  %v151_v9 = vrot.slane %v146_v7, %v150_v6 }
  0x30   :  { %v155_v10 = vrot.slane %v146_v7, %v154_v8 }
  0x31   :  { %353 = vmatpush1.bf16.msra.mxu1 %v352_v20 }
  0x32   :  { %417 = vmatpush1.bf16.msra.mxu0 %v416_v21  ;;  %355 = vmatprep.subr.bf16.mxu1 %v354_v22 }
  0x33   :  { %419 = vmatprep.subr.bf16.mxu0 %v418_v26 }
  0x35   :  { %357 = vmatpush1.bf16.msra.mxu1 %v356_v32 }
  0x36   :  { %421 = vmatpush1.bf16.msra.mxu0 %v420_v33  ;;  %359 = vmatprep.subr.bf16.mxu1 %v358_v34 }
  0x37   :  { %423 = vmatprep.subr.bf16.mxu0 %v422_v38 }
  0x39   :  { %361 = vmatpush1.bf16.msra.mxu1 %v360_v44 }
  0x3a   :  { %425 = vmatpush1.bf16.msra.mxu0 %v424_v45  ;;  %363 = vmatprep.subr.bf16.mxu1 %v362_v46 }
  0x3b   :  { %427 = vmatprep.subr.bf16.mxu0 %v426_v50 }
  0x3d   :  { %365 = vmatpush1.bf16.msra.mxu1 %v364_v56 }
  0x3e   :  { %429 = vmatpush1.bf16.msra.mxu0 %v428_v57  ;;  %367 = vmatprep.subr.bf16.mxu1 %v366_v58 }
  0x3f   :  { %431 = vmatprep.subr.bf16.mxu0 %v430_v61 }
  0x41   :  { %369 = vmatpush1.bf16.msra.mxu1 %v368_v0 }
  0x42   :  { %433 = vmatpush1.bf16.msra.mxu0 %v432_v1 }
  0x44   :  { %223 = vmatmul.mubr.f32.vlgmr.msra.gmra.mrb[0].mxu1 %v14_v2 }
  0x45   :  { %294 = vmatmul.mubr.f32.vlgmr.msra.gmra.mrb[0].mxu0 %v16_v3 }
 0x117   :  { %v224_v11 = vpop.f32.mrb[0].mxu1 }
 0x118   :  { %v225_v12 = vadd.f32 %v224_v11, %v151_v9  ;;  %v226_v13 = vpop.f32.mrb[1].mxu1  ;;  %v295_v14 = vpop.f32.mrb[0].mxu0 }
 0x119   :  { %v227_v15 = vadd.f32 %v226_v13, %v155_v10  ;;  %v297_v16 = vpop.f32.mrb[1].mxu0 }
 0x11a   :  { %v296_v17 = vadd.f32 %v295_v14, %v225_v12 }
 0x11b   :  { %v298_v18 = vadd.f32 %v297_v16, %v227_v15 }
 0x11c   :  { %300 = vst [vmem:[%s866_s3] sm:$0xff] %v296_v17 }
 0x11d   :  { %301 = vst [vmem:[%s866_s3 + $0x8] sm:$0xff] %v298_v18 }

</bundles_post_ra>
